<compile_context>
chip_gen: v5e
topology: v5e:2x2
jax: 0.10.0
libtpu: 0.0.40
codegen_flags: <defaults>
</compile_context>

<pallas_src>
import functools

import jax
import jax.numpy as jnp
from jax.experimental import pallas as pl
from jax.experimental.pallas import tpu as pltpu

K_NEIGHBORS = 8

# Python scalars only (NOT jnp arrays) so kernels never capture traced constants.
NEG_BIG = -3.0e38
POS_BIG = 3.0e38

# Scoped-VMEM ceiling: conservative for v7x (64 MiB physical per TensorCore); v5e/v6e
# could go higher, 48 MiB is safe on all three generations.
VMEM_LIMIT_BYTES = 48 << 20
# Budget for the dominant (R, N) f32 score tile of the kNN kernel.
SCORE_TILE_BUDGET_BYTES = 12 << 20


def _round_up(x, m):
    return (x + m - 1) // m * m


def _choose_block_rows(n, budget_bytes=SCORE_TILE_BUDGET_BYTES):
    """Largest row block R (multiple of 8, <= 512) whose (R, n_pad) f32 score tile stays
    under budget_bytes.  The caller pads N up to a multiple of R, so there is never a
    silent fallback to a full (N, N) tile."""
    cap = _round_up(n, 8)
    for r in (512, 256, 128, 64, 32, 16, 8):
        if r > cap:
            continue
        n_pad = _round_up(n, r)
        if r * n_pad * 4 <= budget_bytes:
            return r
    return 8


# ---------------------------------------------------------------------------
# Kernel 1: fused kNN (pairwise scores + top-8 selection), streamed over row blocks.
# score(i, j) = 2*x_i.x_j - ||x_j||^2  (the per-row constant ||x_i||^2 does not change
# the ordering); the diagonal is forced first to realize loop=True.
# ---------------------------------------------------------------------------
def _knn_kernel(xb_ref, xall_ref, sq_ref, idx_ref, *, k, block_rows, n_real):
    xb = xb_ref[...]                           # (R, D)  query rows
    xa = xall_ref[...]                         # (Np, D) all points (VMEM resident)
    sq = sq_ref[...]                           # (1, Np) ||x_j||^2
    r = xb.shape[0]
    n = xa.shape[0]

    # (R, Np) similarity on the MXU: contract the feature dims.
    gram = jax.lax.dot_general(
        xb, xa, (((1,), (1,)), ((), ())), preferred_element_type=jnp.float32)
    score = 2.0 * gram - sq                    # higher score == closer

    col_ids = jax.lax.broadcasted_iota(jnp.int32, (r, n), 1)
    row_ids = (jax.lax.broadcasted_iota(jnp.int32, (r, n), 0)
               + pl.program_id(0) * block_rows)
    if n_real < n:                             # never select padded points
        score = jnp.where(col_ids >= n_real, NEG_BIG, score)
    # loop=True: guarantee the self edge is selected first.
    score = jnp.where(col_ids == row_ids, POS_BIG, score)

    # Iterative top-k (k=8), integer-index path: max reduce -> smallest attaining
    # column index -> knock it out.  All in VMEM; only the (R, k) ids hit HBM.
    # TODO(synk): torch_cluster.knn_graph tie-breaking order is not bit-exact here.
    out_idx = jnp.zeros((r, k), jnp.int32)
    slot_ids = jax.lax.broadcasted_iota(jnp.int32, (r, k), 1)
    for kk in range(k):
        m = jnp.max(score, axis=-1, keepdims=True)                        # (R, 1)
        sel = jnp.min(jnp.where(score >= m, col_ids, n),
                      axis=-1, keepdims=True)                             # (R, 1) int32
        out_idx = jnp.where(slot_ids == kk, sel, out_idx)
        score = jnp.where(col_ids == sel, NEG_BIG, score)
    idx_ref[...] = out_idx                                                # one dense store


def knn_indices(x_pad, n_real, block_rows, k=K_NEIGHBORS):
    n_pad, d = x_pad.shape
    sq = jnp.sum(x_pad * x_pad, axis=-1)[None, :]                         # (1, Np) O(N) glue
    kernel = functools.partial(_knn_kernel, k=k, block_rows=block_rows, n_real=n_real)
    return pl.pallas_call(
        kernel,
        out_shape=jax.ShapeDtypeStruct((n_pad, k), jnp.int32),
        grid_spec=pltpu.PrefetchScalarGridSpec(
            num_scalar_prefetch=0,
            grid=(n_pad // block_rows,),
            in_specs=[
                pl.BlockSpec((block_rows, d), lambda i: (i, 0)),   # query rows (tiled)
                pl.BlockSpec((n_pad, d), lambda i: (0, 0)),        # all points (resident)
                pl.BlockSpec((1, n_pad), lambda i: (0, 0)),        # column ||x_j||^2
            ],
            out_specs=pl.BlockSpec((block_rows, k), lambda i: (i, 0)),
        ),
        compiler_params=pltpu.CompilerParams(
            dimension_semantics=("parallel",),
            vmem_limit_bytes=VMEM_LIMIT_BYTES),
    )(x_pad, x_pad, sq)


# ---------------------------------------------------------------------------
# Kernel 2: per-node half of the EdgeConv MLP (first linear, split algebraically and
# fused into a single matmul / lane-dense store):
#   z = x @ [W_top - W_bot | W_bot] + [b1 | 0]   ->  z = [z_c | z_n]  (R, 2*h0)
# ---------------------------------------------------------------------------
def _node_mlp_kernel(x_ref, w_ref, b_ref, z_ref):
    z_ref[...] = (jnp.dot(x_ref[...], w_ref[...], preferred_element_type=jnp.float32)
                  + b_ref[...])


def node_transform(x, w1, b1, block_rows):
    n_pad, din = x.shape
    h0 = w1.shape[1]
    w_fused = jnp.concatenate([w1[:din] - w1[din:], w1[din:]], axis=1)     # (din, 2*h0)
    b_fused = jnp.concatenate([b1, jnp.zeros_like(b1)]).reshape(1, -1)     # (1, 2*h0)
    return pl.pallas_call(
        _node_mlp_kernel,
        out_shape=jax.ShapeDtypeStruct((n_pad, 2 * h0), jnp.float32),
        grid_spec=pltpu.PrefetchScalarGridSpec(
            num_scalar_prefetch=0,
            grid=(n_pad // block_rows,),
            in_specs=[
                pl.BlockSpec((block_rows, din), lambda i: (i, 0)),
                pl.BlockSpec((din, 2 * h0), lambda i: (0, 0)),
                pl.BlockSpec((1, 2 * h0), lambda i: (0, 0)),
            ],
            out_specs=pl.BlockSpec((block_rows, 2 * h0), lambda i: (i, 0)),
        ),
        compiler_params=pltpu.CompilerParams(
            dimension_semantics=("parallel",),
            vmem_limit_bytes=VMEM_LIMIT_BYTES),
    )(x, w_fused, b_fused)


# ---------------------------------------------------------------------------
# Kernel 3: EdgeConv aggregation.  Neighbor rows are pre-gathered (O(N*K*h0)) and
# streamed in as (K, R, h0); per k the kernel does
#   h_k = relu(z_c + zn_gathered[k]);  m_k = h_k @ W2;  acc = max(acc, m_k)
# then out = acc + b2 (+ optional fused post-conv ReLU).  b2 is hoisted out of the max.
# ---------------------------------------------------------------------------
def _edge_aggr_kernel(z_ref, znb_ref, w2_ref, b2_ref, out_ref, *, k, h0, apply_relu):
    z = z_ref[...]                              # (R, 2*h0)  [z_c | z_n]
    zc = z[:, :h0]                              # (R, h0)    z_c already includes b1
    w2 = w2_ref[...]                            # (h0, dout)

    acc = None
    for kk in range(k):                         # incremental: tiny live set per step
        h = jnp.maximum(zc + znb_ref[kk], 0.0)                            # (R, h0)
        m = jnp.dot(h, w2, preferred_element_type=jnp.float32)            # (R, dout)
        acc = m if acc is None else jnp.maximum(acc, m)                   # aggr='max'

    result = acc + b2_ref[...]                  # b2 hoisted out of the max
    if apply_relu:                              # fused post-conv ReLU
        result = jnp.maximum(result, 0.0)
    out_ref[...] = result                       # single dense store


def edge_conv_aggregate(z, znb, w2, b2, apply_relu, block_rows):
    n_pad, two_h0 = z.shape
    h0 = two_h0 // 2
    k = znb.shape[0]
    dout = w2.shape[1]
    kernel = functools.partial(_edge_aggr_kernel, k=k, h0=h0, apply_relu=apply_relu)
    return pl.pallas_call(
        kernel,
        out_shape=jax.ShapeDtypeStruct((n_pad, dout), jnp.float32),
        grid_spec=pltpu.PrefetchScalarGridSpec(
            num_scalar_prefetch=0,
            grid=(n_pad // block_rows,),
            in_specs=[
                pl.BlockSpec((block_rows, two_h0), lambda i: (i, 0)),      # [z_c | z_n]
                pl.BlockSpec((k, block_rows, h0), lambda i: (0, i, 0)),    # gathered z_n[j]
                pl.BlockSpec((h0, dout), lambda i: (0, 0)),
                pl.BlockSpec((1, dout), lambda i: (0, 0)),
            ],
            out_specs=pl.BlockSpec((block_rows, dout), lambda i: (i, 0)),
        ),
        compiler_params=pltpu.CompilerParams(
            dimension_semantics=("parallel",),
            vmem_limit_bytes=VMEM_LIMIT_BYTES),
    )(z, znb, w2, b2.reshape(1, -1))


# ---------------------------------------------------------------------------
# Parameter init (deterministic, mirrors torch.nn.Linear default init shapes).
# ---------------------------------------------------------------------------
def _init_linear(key, fan_in, fan_out):
    kw, kb = jax.random.split(key)
    bound = float(fan_in) ** -0.5
    w = jax.random.uniform(kw, (fan_in, fan_out), jnp.float32, -bound, bound)
    b = jax.random.uniform(kb, (fan_out,), jnp.float32, -bound, bound)
    return w, b


class EdgeConvFeatureExtractorPallas:
    def __init__(self, input_dim, hidden_dims, output_dim, key):
        k1, k2, k3, k4 = jax.random.split(key, 4)
        # edge_conv1 MLP: Linear(2*input_dim, h0) -> ReLU -> Linear(h0, h1)
        self.w11, self.b11 = _init_linear(k1, 2 * input_dim, hidden_dims[0])
        self.w12, self.b12 = _init_linear(k2, hidden_dims[0], hidden_dims[1])
        # edge_conv2 MLP: Linear(2*h1, h1) -> ReLU -> Linear(h1, output_dim)
        self.w21, self.b21 = _init_linear(k3, 2 * hidden_dims[1], hidden_dims[1])
        self.w22, self.b22 = _init_linear(k4, hidden_dims[1], output_dim)

    def __call__(self, point_cloud):
        b, p, d = point_cloud.shape
        n = b * p
        x = point_cloud.reshape(n, d).astype(jnp.float32)      # (N, D)

        # Row-block choice + padding so every block divides evenly (kNN masks the
        # padded columns so real rows never pick padded points).
        block_rows = _choose_block_rows(n)
        n_pad = _round_up(n, block_rows)
        if n_pad != n:
            x = jnp.pad(x, ((0, n_pad - n), (0, 0)))

        # knn_graph(x, k=8, loop=True): fused distance + top-8, (N, N) never hits HBM.
        nbr_idx = knn_indices(x, n, block_rows, K_NEIGHBORS)    # (Np, 8) int32

        # EdgeConv 1 (+ fused .relu()).
        h0 = self.w11.shape[1]
        z1 = node_transform(x, self.w11, self.b11, block_rows)              # (Np, 2*h0)
        znb1 = jnp.take(z1[:, h0:], nbr_idx.T, axis=0)                      # (K, Np, h0) XLA gather
        x1 = edge_conv_aggregate(z1, znb1, self.w12, self.b12, True, block_rows)

        # EdgeConv 2 (same edge_index, as in the reference).
        h1 = self.w21.shape[1]
        z2 = node_transform(x1, self.w21, self.b21, block_rows)             # (Np, 2*h1)
        znb2 = jnp.take(z2[:, h1:], nbr_idx.T, axis=0)                      # (K, Np, h1)
        x2 = edge_conv_aggregate(z2, znb2, self.w22, self.b22, False, block_rows)

        return x2[:n].reshape(b, p, -1)


if __name__ == "__main__":
    key = jax.random.PRNGKey(0)
    k_data, k_params = jax.random.split(key)

    batch, num_points, input_dim = 2, 16, 4
    hidden_dims = [32, 32]
    output_dim = 16

    point_cloud = jax.random.normal(
        k_data, (batch, num_points, input_dim), dtype=jnp.float32
    )

    model = EdgeConvFeatureExtractorPallas(input_dim, hidden_dims, output_dim, k_params)
    out = model(point_cloud)
    out = jax.block_until_ready(out)

    assert out.shape == (batch, num_points, output_dim), out.shape
    assert bool(jnp.all(jnp.isfinite(out)))
    print("KERNEL_OK")
</pallas_src>

<mosaic_0001>
module attributes {stable_mosaic.version = 11 : i64} {
  func.func @_knn_kernel(%arg0: i32, %arg1: memref<32x4xf32, #tpu.memory_space<vmem>>, %arg2: memref<32x4xf32, #tpu.memory_space<vmem>>, %arg3: memref<1x32xf32, #tpu.memory_space<vmem>>, %arg4: memref<32x8xi32, #tpu.memory_space<vmem>>) attributes {dimension_semantics = [#tpu.dimension_semantics<parallel>], iteration_bounds = array<i64: 1>, scalar_prefetch = 0 : i64, scratch_operands = 0 : i64, tpu.core_type = #tpu.core_type<tc>, window_params = [{transform_indices = @transform_0, window_bounds = array<i64: 32, 4>}, {pipeline_mode = #tpu.pipeline_mode<synchronous>, transform_indices = @transform_1, window_bounds = array<i64: 32, 4>}, {pipeline_mode = #tpu.pipeline_mode<synchronous>, transform_indices = @transform_2, window_bounds = array<i64: 1, 32>}, {transform_indices = @transform_3, window_bounds = array<i64: 32, 8>}]} {
    %c0 = arith.constant 0 : index
    %c0_0 = arith.constant 0 : index
    %0 = vector.load %arg1[%c0, %c0_0] : memref<32x4xf32, #tpu.memory_space<vmem>>, vector<32x4xf32>
    %c0_1 = arith.constant 0 : index
    %c0_2 = arith.constant 0 : index
    %1 = vector.load %arg2[%c0_1, %c0_2] : memref<32x4xf32, #tpu.memory_space<vmem>>, vector<32x4xf32>
    %c0_3 = arith.constant 0 : index
    %c0_4 = arith.constant 0 : index
    %2 = vector.load %arg3[%c0_3, %c0_4] : memref<1x32xf32, #tpu.memory_space<vmem>>, vector<1x32xf32>
    %cst = arith.constant dense<0.000000e+00> : vector<32x32xf32>
    %3 = tpu.matmul %0, %1, %cst {dimension_numbers = #tpu.dot_dimension_numbers<[1], [1], [0], [0], [0, 0, 1, 0], [], []>} : vector<32x4xf32>, vector<32x4xf32>, vector<32x32xf32> -> vector<32x32xf32>
    %cst_5 = arith.constant 2.000000e+00 : f32
    %4 = vector.broadcast %cst_5 : f32 to vector<32x32xf32>
    %5 = arith.mulf %4, %3 : vector<32x32xf32>
    %6 = vector.broadcast %2 : vector<1x32xf32> to vector<32x32xf32>
    %7 = arith.subf %5, %6 : vector<32x32xf32>
    %8 = tpu.iota {dimensions = array<i32: 1>} : vector<32x32xi32>
    %9 = tpu.iota {dimensions = array<i32: 0>} : vector<32x32xi32>
    %c32_i32 = arith.constant 32 : i32
    %10 = arith.muli %arg0, %c32_i32 : i32
    %11 = vector.broadcast %10 : i32 to vector<32x32xi32>
    %12 = arith.addi %9, %11 : vector<32x32xi32>
    %13 = arith.cmpi eq, %8, %12 : vector<32x32xi32>
    %cst_6 = arith.constant 3.000000e+38 : f32
    %14 = vector.broadcast %cst_6 : f32 to vector<32x32xf32>
    %15 = arith.select %13, %14, %7 : vector<32x32xi1>, vector<32x32xf32>
    %c0_i32 = arith.constant 0 : i32
    %16 = vector.broadcast %c0_i32 : i32 to vector<32x8xi32>
    %17 = tpu.iota {dimensions = array<i32: 1>} : vector<32x8xi32>
    %cst_7 = arith.constant dense<0xFF800000> : vector<32xf32>
    %18 = vector.multi_reduction <maximumf>, %15, %cst_7 [1] : vector<32x32xf32> to vector<32xf32>
    %19 = vector.shape_cast %18 : vector<32xf32> to vector<32x1xf32>
    %20 = vector.broadcast %19 : vector<32x1xf32> to vector<32x32xf32>
    %21 = arith.cmpf oge, %15, %20 : vector<32x32xf32>
    %c32_i32_8 = arith.constant 32 : i32
    %22 = vector.broadcast %c32_i32_8 : i32 to vector<32x32xi32>
    %23 = arith.select %21, %8, %22 : vector<32x32xi1>, vector<32x32xi32>
    %cst_9 = arith.constant dense<2147483647> : vector<32xi32>
    %24 = vector.multi_reduction <minsi>, %23, %cst_9 [1] : vector<32x32xi32> to vector<32xi32>
    %25 = vector.shape_cast %24 : vector<32xi32> to vector<32x1xi32>
    %c0_i32_10 = arith.constant 0 : i32
    %26 = vector.broadcast %c0_i32_10 : i32 to vector<32x8xi32>
    %27 = arith.cmpi eq, %17, %26 : vector<32x8xi32>
    %28 = vector.shape_cast %25 : vector<32x1xi32> to vector<32x1xi32>
    %29 = vector.broadcast %28 : vector<32x1xi32> to vector<32x8xi32>
    %30 = arith.select %27, %29, %16 : vector<32x8xi1>, vector<32x8xi32>
    %31 = vector.broadcast %25 : vector<32x1xi32> to vector<32x32xi32>
    %32 = arith.cmpi eq, %8, %31 : vector<32x32xi32>
    %cst_11 = arith.constant -3.000000e+38 : f32
    %33 = vector.broadcast %cst_11 : f32 to vector<32x32xf32>
    %34 = arith.select %32, %33, %15 : vector<32x32xi1>, vector<32x32xf32>
    %cst_12 = arith.constant dense<0xFF800000> : vector<32xf32>
    %35 = vector.multi_reduction <maximumf>, %34, %cst_12 [1] : vector<32x32xf32> to vector<32xf32>
    %36 = vector.shape_cast %35 : vector<32xf32> to vector<32x1xf32>
    %37 = vector.broadcast %36 : vector<32x1xf32> to vector<32x32xf32>
    %38 = arith.cmpf oge, %34, %37 : vector<32x32xf32>
    %c32_i32_13 = arith.constant 32 : i32
    %39 = vector.broadcast %c32_i32_13 : i32 to vector<32x32xi32>
    %40 = arith.select %38, %8, %39 : vector<32x32xi1>, vector<32x32xi32>
    %cst_14 = arith.constant dense<2147483647> : vector<32xi32>
    %41 = vector.multi_reduction <minsi>, %40, %cst_14 [1] : vector<32x32xi32> to vector<32xi32>
    %42 = vector.shape_cast %41 : vector<32xi32> to vector<32x1xi32>
    %c1_i32 = arith.constant 1 : i32
    %43 = vector.broadcast %c1_i32 : i32 to vector<32x8xi32>
    %44 = arith.cmpi eq, %17, %43 : vector<32x8xi32>
    %45 = vector.shape_cast %42 : vector<32x1xi32> to vector<32x1xi32>
    %46 = vector.broadcast %45 : vector<32x1xi32> to vector<32x8xi32>
    %47 = arith.select %44, %46, %30 : vector<32x8xi1>, vector<32x8xi32>
    %48 = vector.broadcast %42 : vector<32x1xi32> to vector<32x32xi32>
    %49 = arith.cmpi eq, %8, %48 : vector<32x32xi32>
    %cst_15 = arith.constant -3.000000e+38 : f32
    %50 = vector.broadcast %cst_15 : f32 to vector<32x32xf32>
    %51 = arith.select %49, %50, %34 : vector<32x32xi1>, vector<32x32xf32>
    %cst_16 = arith.constant dense<0xFF800000> : vector<32xf32>
    %52 = vector.multi_reduction <maximumf>, %51, %cst_16 [1] : vector<32x32xf32> to vector<32xf32>
    %53 = vector.shape_cast %52 : vector<32xf32> to vector<32x1xf32>
    %54 = vector.broadcast %53 : vector<32x1xf32> to vector<32x32xf32>
    %55 = arith.cmpf oge, %51, %54 : vector<32x32xf32>
    %c32_i32_17 = arith.constant 32 : i32
    %56 = vector.broadcast %c32_i32_17 : i32 to vector<32x32xi32>
    %57 = arith.select %55, %8, %56 : vector<32x32xi1>, vector<32x32xi32>
    %cst_18 = arith.constant dense<2147483647> : vector<32xi32>
    %58 = vector.multi_reduction <minsi>, %57, %cst_18 [1] : vector<32x32xi32> to vector<32xi32>
    %59 = vector.shape_cast %58 : vector<32xi32> to vector<32x1xi32>
    %c2_i32 = arith.constant 2 : i32
    %60 = vector.broadcast %c2_i32 : i32 to vector<32x8xi32>
    %61 = arith.cmpi eq, %17, %60 : vector<32x8xi32>
    %62 = vector.shape_cast %59 : vector<32x1xi32> to vector<32x1xi32>
    %63 = vector.broadcast %62 : vector<32x1xi32> to vector<32x8xi32>
    %64 = arith.select %61, %63, %47 : vector<32x8xi1>, vector<32x8xi32>
    %65 = vector.broadcast %59 : vector<32x1xi32> to vector<32x32xi32>
    %66 = arith.cmpi eq, %8, %65 : vector<32x32xi32>
    %cst_19 = arith.constant -3.000000e+38 : f32
    %67 = vector.broadcast %cst_19 : f32 to vector<32x32xf32>
    %68 = arith.select %66, %67, %51 : vector<32x32xi1>, vector<32x32xf32>
    %cst_20 = arith.constant dense<0xFF800000> : vector<32xf32>
    %69 = vector.multi_reduction <maximumf>, %68, %cst_20 [1] : vector<32x32xf32> to vector<32xf32>
    %70 = vector.shape_cast %69 : vector<32xf32> to vector<32x1xf32>
    %71 = vector.broadcast %70 : vector<32x1xf32> to vector<32x32xf32>
    %72 = arith.cmpf oge, %68, %71 : vector<32x32xf32>
    %c32_i32_21 = arith.constant 32 : i32
    %73 = vector.broadcast %c32_i32_21 : i32 to vector<32x32xi32>
    %74 = arith.select %72, %8, %73 : vector<32x32xi1>, vector<32x32xi32>
    %cst_22 = arith.constant dense<2147483647> : vector<32xi32>
    %75 = vector.multi_reduction <minsi>, %74, %cst_22 [1] : vector<32x32xi32> to vector<32xi32>
    %76 = vector.shape_cast %75 : vector<32xi32> to vector<32x1xi32>
    %c3_i32 = arith.constant 3 : i32
    %77 = vector.broadcast %c3_i32 : i32 to vector<32x8xi32>
    %78 = arith.cmpi eq, %17, %77 : vector<32x8xi32>
    %79 = vector.shape_cast %76 : vector<32x1xi32> to vector<32x1xi32>
    %80 = vector.broadcast %79 : vector<32x1xi32> to vector<32x8xi32>
    %81 = arith.select %78, %80, %64 : vector<32x8xi1>, vector<32x8xi32>
    %82 = vector.broadcast %76 : vector<32x1xi32> to vector<32x32xi32>
    %83 = arith.cmpi eq, %8, %82 : vector<32x32xi32>
    %cst_23 = arith.constant -3.000000e+38 : f32
    %84 = vector.broadcast %cst_23 : f32 to vector<32x32xf32>
    %85 = arith.select %83, %84, %68 : vector<32x32xi1>, vector<32x32xf32>
    %cst_24 = arith.constant dense<0xFF800000> : vector<32xf32>
    %86 = vector.multi_reduction <maximumf>, %85, %cst_24 [1] : vector<32x32xf32> to vector<32xf32>
    %87 = vector.shape_cast %86 : vector<32xf32> to vector<32x1xf32>
    %88 = vector.broadcast %87 : vector<32x1xf32> to vector<32x32xf32>
    %89 = arith.cmpf oge, %85, %88 : vector<32x32xf32>
    %c32_i32_25 = arith.constant 32 : i32
    %90 = vector.broadcast %c32_i32_25 : i32 to vector<32x32xi32>
    %91 = arith.select %89, %8, %90 : vector<32x32xi1>, vector<32x32xi32>
    %cst_26 = arith.constant dense<2147483647> : vector<32xi32>
    %92 = vector.multi_reduction <minsi>, %91, %cst_26 [1] : vector<32x32xi32> to vector<32xi32>
    %93 = vector.shape_cast %92 : vector<32xi32> to vector<32x1xi32>
    %c4_i32 = arith.constant 4 : i32
    %94 = vector.broadcast %c4_i32 : i32 to vector<32x8xi32>
    %95 = arith.cmpi eq, %17, %94 : vector<32x8xi32>
    %96 = vector.shape_cast %93 : vector<32x1xi32> to vector<32x1xi32>
    %97 = vector.broadcast %96 : vector<32x1xi32> to vector<32x8xi32>
    %98 = arith.select %95, %97, %81 : vector<32x8xi1>, vector<32x8xi32>
    %99 = vector.broadcast %93 : vector<32x1xi32> to vector<32x32xi32>
    %100 = arith.cmpi eq, %8, %99 : vector<32x32xi32>
    %cst_27 = arith.constant -3.000000e+38 : f32
    %101 = vector.broadcast %cst_27 : f32 to vector<32x32xf32>
    %102 = arith.select %100, %101, %85 : vector<32x32xi1>, vector<32x32xf32>
    %cst_28 = arith.constant dense<0xFF800000> : vector<32xf32>
    %103 = vector.multi_reduction <maximumf>, %102, %cst_28 [1] : vector<32x32xf32> to vector<32xf32>
    %104 = vector.shape_cast %103 : vector<32xf32> to vector<32x1xf32>
    %105 = vector.broadcast %104 : vector<32x1xf32> to vector<32x32xf32>
    %106 = arith.cmpf oge, %102, %105 : vector<32x32xf32>
    %c32_i32_29 = arith.constant 32 : i32
    %107 = vector.broadcast %c32_i32_29 : i32 to vector<32x32xi32>
    %108 = arith.select %106, %8, %107 : vector<32x32xi1>, vector<32x32xi32>
    %cst_30 = arith.constant dense<2147483647> : vector<32xi32>
    %109 = vector.multi_reduction <minsi>, %108, %cst_30 [1] : vector<32x32xi32> to vector<32xi32>
    %110 = vector.shape_cast %109 : vector<32xi32> to vector<32x1xi32>
    %c5_i32 = arith.constant 5 : i32
    %111 = vector.broadcast %c5_i32 : i32 to vector<32x8xi32>
    %112 = arith.cmpi eq, %17, %111 : vector<32x8xi32>
    %113 = vector.shape_cast %110 : vector<32x1xi32> to vector<32x1xi32>
    %114 = vector.broadcast %113 : vector<32x1xi32> to vector<32x8xi32>
    %115 = arith.select %112, %114, %98 : vector<32x8xi1>, vector<32x8xi32>
    %116 = vector.broadcast %110 : vector<32x1xi32> to vector<32x32xi32>
    %117 = arith.cmpi eq, %8, %116 : vector<32x32xi32>
    %cst_31 = arith.constant -3.000000e+38 : f32
    %118 = vector.broadcast %cst_31 : f32 to vector<32x32xf32>
    %119 = arith.select %117, %118, %102 : vector<32x32xi1>, vector<32x32xf32>
    %cst_32 = arith.constant dense<0xFF800000> : vector<32xf32>
    %120 = vector.multi_reduction <maximumf>, %119, %cst_32 [1] : vector<32x32xf32> to vector<32xf32>
    %121 = vector.shape_cast %120 : vector<32xf32> to vector<32x1xf32>
    %122 = vector.broadcast %121 : vector<32x1xf32> to vector<32x32xf32>
    %123 = arith.cmpf oge, %119, %122 : vector<32x32xf32>
    %c32_i32_33 = arith.constant 32 : i32
    %124 = vector.broadcast %c32_i32_33 : i32 to vector<32x32xi32>
    %125 = arith.select %123, %8, %124 : vector<32x32xi1>, vector<32x32xi32>
    %cst_34 = arith.constant dense<2147483647> : vector<32xi32>
    %126 = vector.multi_reduction <minsi>, %125, %cst_34 [1] : vector<32x32xi32> to vector<32xi32>
    %127 = vector.shape_cast %126 : vector<32xi32> to vector<32x1xi32>
    %c6_i32 = arith.constant 6 : i32
    %128 = vector.broadcast %c6_i32 : i32 to vector<32x8xi32>
    %129 = arith.cmpi eq, %17, %128 : vector<32x8xi32>
    %130 = vector.shape_cast %127 : vector<32x1xi32> to vector<32x1xi32>
    %131 = vector.broadcast %130 : vector<32x1xi32> to vector<32x8xi32>
    %132 = arith.select %129, %131, %115 : vector<32x8xi1>, vector<32x8xi32>
    %133 = vector.broadcast %127 : vector<32x1xi32> to vector<32x32xi32>
    %134 = arith.cmpi eq, %8, %133 : vector<32x32xi32>
    %cst_35 = arith.constant -3.000000e+38 : f32
    %135 = vector.broadcast %cst_35 : f32 to vector<32x32xf32>
    %136 = arith.select %134, %135, %119 : vector<32x32xi1>, vector<32x32xf32>
    %cst_36 = arith.constant dense<0xFF800000> : vector<32xf32>
    %137 = vector.multi_reduction <maximumf>, %136, %cst_36 [1] : vector<32x32xf32> to vector<32xf32>
    %138 = vector.shape_cast %137 : vector<32xf32> to vector<32x1xf32>
    %139 = vector.broadcast %138 : vector<32x1xf32> to vector<32x32xf32>
    %140 = arith.cmpf oge, %136, %139 : vector<32x32xf32>
    %c32_i32_37 = arith.constant 32 : i32
    %141 = vector.broadcast %c32_i32_37 : i32 to vector<32x32xi32>
    %142 = arith.select %140, %8, %141 : vector<32x32xi1>, vector<32x32xi32>
    %cst_38 = arith.constant dense<2147483647> : vector<32xi32>
    %143 = vector.multi_reduction <minsi>, %142, %cst_38 [1] : vector<32x32xi32> to vector<32xi32>
    %144 = vector.shape_cast %143 : vector<32xi32> to vector<32x1xi32>
    %c7_i32 = arith.constant 7 : i32
    %145 = vector.broadcast %c7_i32 : i32 to vector<32x8xi32>
    %146 = arith.cmpi eq, %17, %145 : vector<32x8xi32>
    %147 = vector.shape_cast %144 : vector<32x1xi32> to vector<32x1xi32>
    %148 = vector.broadcast %147 : vector<32x1xi32> to vector<32x8xi32>
    %149 = arith.select %146, %148, %132 : vector<32x8xi1>, vector<32x8xi32>
    %c0_39 = arith.constant 0 : index
    %c0_40 = arith.constant 0 : index
    %150 = vector.load %arg4[%c0_39, %c0_40] : memref<32x8xi32, #tpu.memory_space<vmem>>, vector<32x8xi32>
    tpu.vector_store %arg4[%c0_39, %c0_40], %149 {strides = array<i32>} : memref<32x8xi32, #tpu.memory_space<vmem>>, vector<32x8xi32>,
    return
  }
  func.func @transform_0(%arg0: i32) -> (i32, i32) {
    %c0_i32 = arith.constant 0 : i32
    %c0_i32_0 = arith.constant 0 : i32
    return %arg0, %c0_i32 : i32, i32
  }
  func.func @transform_1(%arg0: i32) -> (i32, i32) {
    %c0_i32 = arith.constant 0 : i32
    %c0_i32_0 = arith.constant 0 : i32
    %c0_i32_1 = arith.constant 0 : i32
    return %c0_i32, %c0_i32_0 : i32, i32
  }
  func.func @transform_2(%arg0: i32) -> (i32, i32) {
    %c0_i32 = arith.constant 0 : i32
    %c0_i32_0 = arith.constant 0 : i32
    %c0_i32_1 = arith.constant 0 : i32
    return %c0_i32, %c0_i32_0 : i32, i32
  }
  func.func @transform_3(%arg0: i32) -> (i32, i32) {
    %c0_i32 = arith.constant 0 : i32
    %c0_i32_0 = arith.constant 0 : i32
    return %arg0, %c0_i32 : i32, i32
  }
}

</mosaic_0001>

<bundles_post_ra>
// kernel: tpu_custom_call.1
= control target key start
LH: loop header
LB: loop body
LE: loop exit
PB: predicated region body
PF: predicated region fallthrough
CT: control target
= control target key end

     0   :  { %vm23_vm0 = vcmask 31744   ;;  %v88_v8 = vlaneseq  ;;  %vm109_vm2 = vcmask 261120   ;;  %s1389_s1 = inlined_call_operand.vmem [shape: f32[32,4], index: 1, kind: input, shape index: {}]   ;;  %s1390_s2 = inlined_call_operand.vmem [shape: f32[1,32], index: 2, kind: input, shape index: {}]   ;;  %s1391_s0 = inlined_call_operand.vmem [shape: f32[32,4], index: 0, kind: input, shape index: {}]   ;;  %s1392_s3 = inlined_call_operand.vmem [shape: s32[32,8], index: 3, kind: output, shape index: {}]  }
   0x1   :  { %v21_v0 = vld [vmem:[%s1389_s1 + $0x18] sm:$0xff]  ;;  %v20_v1 = vld [vmem:[%s1389_s1 + $0x10] sm:$0xff]  ;;  %v19_v2 = vld [vmem:[%s1389_s1 + $0x8] sm:$0xff] }
   0x2   :  { %855 = vmatpush.xpose.msk.msra.mxu0 %vm23_vm0, %v21_v0  ;;  %864 = vmatpush.xpose.msk.msra.mxu2 %vm23_vm0, %v21_v0  ;;  %v18_v3 = vld [vmem:[%s1389_s1] sm:$0xff]  ;;  %v16_v5 = vld [vmem:[%s1391_s0 + $0x10] sm:$0xff]  ;;  %v15_v6 = vld [vmem:[%s1391_s0 + $0x8] sm:$0xff]  ;;  %v940_v9 = vand.u32 127, %v88_v8  ;;  %v91_v10 = vshrl.u32 %v88_v8, 7 }
   0x3   :  { %863 = vmatpush.xpose.msk.msra.mxu1 %vm23_vm0, %v21_v0  ;;  %865 = vmatpush.xpose.msk.msra.mxu3 %vm23_vm0, %v21_v0  ;;  %v14_v4 = vld [vmem:[%s1391_s0] sm:$0xff]  ;;  %v17_v7 = vld [vmem:[%s1391_s0 + $0x18] sm:$0xff] }
   0x4   :  { %v875_v11 = vld [vmem:[%s1390_s2] ss:$0 sm:$0xff]  ;;  %vm101_vm1 = vcmp.eq.s32.totalorder %v940_v9, %v91_v10  ;;  %v92_v16 = vadd.s32 8, %v91_v10  ;;  %v93_v18 = vadd.s32 16, %v91_v10  ;;  %v94_v26 = vadd.s32 24, %v91_v10 }
   0x6   :  { %856 = vmatpush.xpose.msk.msra.mxu0 %vm23_vm0, %v20_v1  ;;  %867 = vmatpush.xpose.msk.msra.mxu2 %vm23_vm0, %v20_v1  ;;  %vm102_vm3 = vcmp.eq.s32.totalorder %v940_v9, %v92_v16  ;;  %vm103_vm4 = vcmp.eq.s32.totalorder %v940_v9, %v93_v18  ;;  %vm104_vm5 = vcmp.eq.s32.totalorder %v940_v9, %v94_v26 }
   0x7   :  { %866 = vmatpush.xpose.msk.msra.mxu1 %vm23_vm0, %v20_v1  ;;  %868 = vmatpush.xpose.msk.msra.mxu3 %vm23_vm0, %v20_v1 }
   0xa   :  { %857 = vmatpush.xpose.msk.msra.mxu0 %vm23_vm0, %v19_v2  ;;  %870 = vmatpush.xpose.msk.msra.mxu2 %vm23_vm0, %v19_v2 }
   0xb   :  { %869 = vmatpush.xpose.msk.msra.mxu1 %vm23_vm0, %v19_v2  ;;  %871 = vmatpush.xpose.msk.msra.mxu3 %vm23_vm0, %v19_v2 }
   0xe   :  { %858 = vmatpush.xpose.msk.msra.mxu0 %vm23_vm0, %v18_v3  ;;  %873 = vmatpush.xpose.msk.msra.mxu2 %vm23_vm0, %v18_v3 }
   0xf   :  { %872 = vmatpush.xpose.msk.msra.mxu1 %vm23_vm0, %v18_v3  ;;  %874 = vmatpush.xpose.msk.msra.mxu3 %vm23_vm0, %v18_v3 }
  0x11   :  { %859 = vmatmul.msk.f32.vlgmr.msra.gmra.mxu0 %vm23_vm0, %v14_v4  ;;  %861 = vmatmul.msk.f32.vlgmr.msra.gmra.mxu2 %vm23_vm0, %v16_v5 }
  0x12   :  { %860 = vmatmul.msk.f32.vlgmr.msra.gmra.mxu1 %vm23_vm0, %v15_v6  ;;  %862 = vmatmul.msk.f32.vlgmr.msra.gmra.mxu3 %vm23_vm0, %v17_v7 }
  0x8e   :  { %v65_v12 = vpop.f32.mrf.mxu0 }
  0x8f   :  { %v77_v13 = vmul.f32 2.0, %v65_v12  ;;  %v68_v14 = vpop.f32.mrf.mxu1 }
  0x90   :  { %v78_v15 = vmul.f32 2.0, %v68_v14 }
  0x91   :  { %v84_v17 = vsub.f32 %v77_v13, %v875_v11 }
  0x92   :  { %v85_v20 = vsub.f32 %v78_v15, %v875_v11 }
  0x93   :  { %v946_v19 = vsel %vm101_vm1, 3e+38, %v84_v17 }
  0x94   :  { %v71_v21 = vpop.f32.mrf.mxu2  ;;  %v110_v22 = vsel %vm109_vm2, %v946_v19, -inf  ;;  %v952_v28 = vsel %vm102_vm3, 3e+38, %v85_v20 }
  0x95   :  { %v79_v23 = vmul.f32 2.0, %v71_v21  ;;  %111 = vmax.xlane.f32.xlu0 %v110_v22  ;;  %v74_v24 = vpop.f32.mrf.mxu3  ;;  %v113_v32 = vsel %vm109_vm2, %v952_v28, -inf }
  0x96   :  { %v80_v25 = vmul.f32 2.0, %v74_v24 }
  0x97   :  { %v86_v27 = vsub.f32 %v79_v23, %v875_v11 }
  0x98   :  { %v87_v30 = vsub.f32 %v80_v25, %v875_v11 }
  0x99   :  { %v954_v29 = vsel %vm103_vm4, 3e+38, %v86_v27 }
  0x9a   :  { %v116_v31 = vsel %vm109_vm2, %v954_v29, -inf  ;;  %v961_v33 = vsel %vm104_vm5, 3e+38, %v87_v30 }
  0x9b   :  { %117 = vmax.xlane.f32.xlu1 %v116_v31  ;;  %v119_v34 = vsel %vm109_vm2, %v961_v33, -inf }
  0x9d   :  { %114 = vmax.xlane.f32.xlu0 %v113_v32 }
  0xa3   :  { %120 = vmax.xlane.f32.xlu1 %v119_v34 }
 0x108   :  { %v112_v35 = vpop.xlane.xlu0 %111 }
 0x109   :  { %vm122_vm6 = vcmp.ge.f32.partialorder %v946_v19, %v112_v35 }
 0x10a   :  { %v126_v36 = vsel %vm122_vm6, %v940_v9, 32 }
 0x10b   :  { %v130_v37 = vsel %vm109_vm2, %v126_v36, 2147483647 }
 0x10c   :  { %v132_v38 = vshra.s32 %v130_v37, 16  ;;  %v131_v55 = vand.u32 65535, %v130_v37 }
 0x10e   :  { %v118_v39 = vpop.xlane.xlu1 %117  ;;  %v134_v40 = vcvt.s32.f32 %v132_v38  ;;  %v133_v57 = vcvt.s32.f32 %v131_v55 }
 0x10f   :  { %vm124_vm7 = vcmp.ge.f32.partialorder %v954_v29, %v118_v39 }
 0x110   :  { %v128_v41 = vsel %vm124_vm7, %v940_v9, 32  ;;  %135 = vmin.xlane.f32.xlu2 %v134_v40  ;;  %v115_v42 = vpop.xlane.xlu0 %114 }
 0x111   :  { %v160_v43 = vsel %vm109_vm2, %v128_v41, 2147483647  ;;  %vm123_vm8 = vcmp.ge.f32.partialorder %v952_v28, %v115_v42 }
 0x112   :  { %v127_v44 = vsel %vm123_vm8, %v940_v9, 32  ;;  %v162_v45 = vshra.s32 %v160_v43, 16  ;;  %v161_v59 = vand.u32 65535, %v160_v43 }
 0x113   :  { %v145_v46 = vsel %vm109_vm2, %v127_v44, 2147483647 }
 0x114   :  { %v164_v47 = vcvt.s32.f32 %v162_v45  ;;  %v147_v48 = vshra.s32 %v145_v46, 16  ;;  %v146_v60 = vand.u32 65535, %v145_v46  ;;  %v163_v62 = vcvt.s32.f32 %v161_v59 }
 0x116   :  { %v121_v49 = vpop.xlane.xlu1 %120  ;;  %165 = vmin.xlane.f32.xlu0 %v164_v47  ;;  %v149_v50 = vcvt.s32.f32 %v147_v48  ;;  %v148_v1 = vcvt.s32.f32 %v146_v60 }
 0x117   :  { %vm125_vm9 = vcmp.ge.f32.partialorder %v961_v33, %v121_v49 }
 0x118   :  { %v129_v51 = vsel %vm125_vm9, %v940_v9, 32  ;;  %150 = vmin.xlane.f32.xlu2 %v149_v50 }
 0x119   :  { %v175_v52 = vsel %vm109_vm2, %v129_v51, 2147483647 }
 0x11a   :  { %v177_v53 = vshra.s32 %v175_v52, 16  ;;  %v176_v3 = vand.u32 65535, %v175_v52 }
 0x11c   :  { %v179_v54 = vcvt.s32.f32 %v177_v53  ;;  %v178_v5 = vcvt.s32.f32 %v176_v3 }
 0x11e   :  { %180 = vmin.xlane.f32.xlu1 %v179_v54 }
 0x183   :  { %v136_v56 = vpop.xlane.xlu2 %135 }
 0x184   :  { %vm137_vm10 = vcmp.eq.f32.partialorder %v134_v40, %v136_v56  ;;  %v142_v7 = vcvt.f32.s32 %v136_v56 }
 0x185   :  { %v138_v58 = vsel %vm137_vm10, %v133_v57, inf }
 0x186   :  { %139 = vmin.xlane.f32.xlu2 %v138_v58  ;;  %v143_v10 = vshll.u32 %v142_v7, 16 }
 0x189   :  { %v166_v61 = vpop.xlane.xlu0 %165 }
 0x18a   :  { %vm167_vm11 = vcmp.eq.f32.partialorder %v164_v47, %v166_v61  ;;  %v172_v12 = vcvt.f32.s32 %v166_v61 }
 0x18b   :  { %v151_v63 = vpop.xlane.xlu2 %150  ;;  %v168_v0 = vsel %vm167_vm11, %v163_v62, inf  ;;  %vm190_vm11 = vcmp.eq.s32.totalorder %v940_v9, 0 }
 0x18c   :  { %169 = vmin.xlane.f32.xlu1 %v168_v0  ;;  %vm152_vm12 = vcmp.eq.f32.partialorder %v149_v50, %v151_v63  ;;  %v157_v14 = vcvt.f32.s32 %v151_v63  ;;  %v173_v17 = vshll.u32 %v172_v12, 16 }
 0x18d   :  { %v153_v2 = vsel %vm152_vm12, %v148_v1, inf  ;;  %vm283_vm12 = vcmp.eq.s32.totalorder %v940_v9, 1 }
 0x18e   :  { %154 = vmin.xlane.f32.xlu0 %v153_v2  ;;  %v158_v22 = vshll.u32 %v157_v14, 16 }
 0x191   :  { %v181_v4 = vpop.xlane.xlu1 %180 }
 0x192   :  { %vm182_vm13 = vcmp.eq.f32.partialorder %v179_v54, %v181_v4  ;;  %v187_v25 = vcvt.f32.s32 %v181_v4 }
 0x193   :  { %v183_v6 = vsel %vm182_vm13, %v178_v5, inf }
 0x194   :  { %184 = vmin.xlane.f32.xlu2 %v183_v6  ;;  %v188_v32 = vshll.u32 %v187_v25, 16 }
 0x1f9   :  { %v140_v8 = vpop.xlane.xlu2 %139 }
 0x1fa   :  { %v141_v11 = vcvt.f32.s32 %v140_v8 }
 0x1fc   :  { %v977_v13 = vadd.s32 %v143_v10, %v141_v11 }
 0x1fe   :  { %vm195_vm14 = vcmp.eq.s32.totalorder %v940_v9, %v977_v13 }
 0x1ff   :  { %v170_v15 = vpop.xlane.xlu1 %169  ;;  %v982_v16 = vsel %vm195_vm14, -3e+38, %v946_v19 }
 0x200   :  { %v171_v18 = vcvt.f32.s32 %v170_v15  ;;  %v203_v20 = vsel %vm109_vm2, %v982_v16, -inf }
 0x201   :  { %204 = vmax.xlane.f32.xlu0 %v203_v20  ;;  %v155_v21 = vpop.xlane.xlu0 %154 }
 0x202   :  { %v986_v23 = vadd.s32 %v173_v17, %v171_v18  ;;  %v156_v24 = vcvt.f32.s32 %v155_v21  ;;  %v191_v17 = vsel %vm190_vm11, %v977_v13, 0 }
 0x204   :  { %v988_v26 = vadd.s32 %v158_v22, %v156_v24  ;;  %vm197_vm15 = vcmp.eq.s32.totalorder %v940_v9, %v986_v23 }
 0x205   :  { %v993_v19 = vsel %vm197_vm15, -3e+38, %v954_v29 }
 0x206   :  { %v209_v27 = vsel %vm109_vm2, %v993_v19, -inf  ;;  %vm196_vm0 = vcmp.eq.s32.totalorder %v940_v9, %v988_v26 }
 0x207   :  { %v185_v30 = vpop.xlane.xlu2 %184  ;;  %210 = vmax.xlane.f32.xlu2 %v209_v27  ;;  %v1000_v31 = vsel %vm196_vm0, -3e+38, %v952_v28 }
 0x208   :  { %v186_v34 = vcvt.f32.s32 %v185_v30  ;;  %v206_v35 = vsel %vm109_vm2, %v1000_v31, -inf }
 0x209   :  { %207 = vmax.xlane.f32.xlu1 %v206_v35  ;;  %v193_v35 = vsel %vm190_vm11, %v986_v23, 0 }
 0x20a   :  { %v1004_v36 = vadd.s32 %v188_v32, %v186_v34 }
 0x20c   :  { %vm198_vm1 = vcmp.eq.s32.totalorder %v940_v9, %v1004_v36 }
 0x20d   :  { %v1009_v29 = vsel %vm198_vm1, -3e+38, %v961_v33 }
 0x20e   :  { %v212_v37 = vsel %vm109_vm2, %v1009_v29, -inf }
 0x20f   :  { %213 = vmax.xlane.f32.xlu0 %v212_v37 }
 0x274   :  { %v205_v28 = vpop.xlane.xlu0 %204 }
 0x275   :  { %vm215_vm3 = vcmp.ge.f32.partialorder %v982_v16, %v205_v28 }
 0x276   :  { %v219_v38 = vsel %vm215_vm3, %v940_v9, 32 }
 0x277   :  { %v223_v39 = vsel %vm109_vm2, %v219_v38, 2147483647  ;;  %v192_v38 = vsel %vm190_vm11, %v988_v26, 0 }
 0x278   :  { %v225_v40 = vshra.s32 %v223_v39, 16  ;;  %v224_v56 = vand.u32 65535, %v223_v39 }
 0x27a   :  { %v211_v41 = vpop.xlane.xlu2 %210  ;;  %v227_v42 = vcvt.s32.f32 %v225_v40  ;;  %v226_v58 = vcvt.s32.f32 %v224_v56 }
 0x27b   :  { %vm217_vm4 = vcmp.ge.f32.partialorder %v993_v19, %v211_v41 }
 0x27c   :  { %v221_v43 = vsel %vm217_vm4, %v940_v9, 32  ;;  %v208_v33 = vpop.xlane.xlu1 %207  ;;  %228 = vmin.xlane.f32.xlu1 %v227_v42 }
 0x27d   :  { %v253_v44 = vsel %vm109_vm2, %v221_v43, 2147483647  ;;  %vm216_vm5 = vcmp.ge.f32.partialorder %v1000_v31, %v208_v33 }
 0x27e   :  { %v220_v45 = vsel %vm216_vm5, %v940_v9, 32  ;;  %v255_v46 = vshra.s32 %v253_v44, 16  ;;  %v254_v60 = vand.u32 65535, %v253_v44  ;;  %v194_v44 = vsel %vm190_vm11, %v1004_v36, 0 }
 0x27f   :  { %v238_v47 = vsel %vm109_vm2, %v220_v45, 2147483647 }
 0x280   :  { %v257_v48 = vcvt.s32.f32 %v255_v46  ;;  %v240_v49 = vshra.s32 %v238_v47, 16  ;;  %v239_v61 = vand.u32 65535, %v238_v47  ;;  %v256_v63 = vcvt.s32.f32 %v254_v60 }
 0x282   :  { %258 = vmin.xlane.f32.xlu0 %v257_v48  ;;  %v214_v50 = vpop.xlane.xlu0 %213  ;;  %v242_v51 = vcvt.s32.f32 %v240_v49  ;;  %v241_v2 = vcvt.s32.f32 %v239_v61 }
 0x283   :  { %vm218_vm6 = vcmp.ge.f32.partialorder %v1009_v29, %v214_v50 }
 0x284   :  { %v222_v52 = vsel %vm218_vm6, %v940_v9, 32  ;;  %243 = vmin.xlane.f32.xlu2 %v242_v51 }
 0x285   :  { %v268_v53 = vsel %vm109_vm2, %v222_v52, 2147483647 }
 0x286   :  { %v270_v54 = vshra.s32 %v268_v53, 16  ;;  %v269_v4 = vand.u32 65535, %v268_v53 }
 0x288   :  { %v272_v55 = vcvt.s32.f32 %v270_v54  ;;  %v271_v6 = vcvt.s32.f32 %v269_v4 }
 0x28a   :  { %273 = vmin.xlane.f32.xlu1 %v272_v55 }
 0x2ef   :  { %v229_v57 = vpop.xlane.xlu1 %228 }
 0x2f0   :  { %vm230_vm7 = vcmp.eq.f32.partialorder %v227_v42, %v229_v57  ;;  %v235_v8 = vcvt.f32.s32 %v229_v57 }
 0x2f1   :  { %v231_v59 = vsel %vm230_vm7, %v226_v58, inf }
 0x2f2   :  { %232 = vmin.xlane.f32.xlu2 %v231_v59  ;;  %v236_v11 = vshll.u32 %v235_v8, 16 }
 0x2f5   :  { %v259_v62 = vpop.xlane.xlu0 %258 }
 0x2f6   :  { %vm260_vm8 = vcmp.eq.f32.partialorder %v257_v48, %v259_v62  ;;  %v265_v14 = vcvt.f32.s32 %v259_v62 }
 0x2f7   :  { %v244_v0 = vpop.xlane.xlu2 %243  ;;  %v261_v1 = vsel %vm260_vm8, %v256_v63, inf }
 0x2f8   :  { %262 = vmin.xlane.f32.xlu1 %v261_v1  ;;  %vm245_vm9 = vcmp.eq.f32.partialorder %v242_v51, %v244_v0  ;;  %v250_v18 = vcvt.f32.s32 %v244_v0  ;;  %v266_v24 = vshll.u32 %v265_v14, 16 }
 0x2f9   :  { %v246_v3 = vsel %vm245_vm9, %v241_v2, inf }
 0x2fa   :  { %247 = vmin.xlane.f32.xlu0 %v246_v3  ;;  %v251_v32 = vshll.u32 %v250_v18, 16 }
 0x2fd   :  { %v274_v5 = vpop.xlane.xlu1 %273 }
 0x2fe   :  { %vm275_vm10 = vcmp.eq.f32.partialorder %v272_v55, %v274_v5  ;;  %v280_v37 = vcvt.f32.s32 %v274_v5 }
 0x2ff   :  { %v276_v7 = vsel %vm275_vm10, %v271_v6, inf  ;;  %vm376_vm10 = vcmp.eq.s32.totalorder %v940_v9, 2 }
 0x300   :  { %277 = vmin.xlane.f32.xlu2 %v276_v7  ;;  %v281_v43 = vshll.u32 %v280_v37, 16 }
 0x365   :  { %v233_v10 = vpop.xlane.xlu2 %232 }
 0x366   :  { %v234_v12 = vcvt.f32.s32 %v233_v10 }
 0x368   :  { %v237_v15 = vadd.s32 %v236_v11, %v234_v12 }
 0x36a   :  { %v1032_v20 = vsel %vm283_vm12, %v237_v15, %v191_v17  ;;  %vm288_vm13 = vcmp.eq.s32.totalorder %v940_v9, %v237_v15 }
 0x36b   :  { %v263_v21 = vpop.xlane.xlu1 %262  ;;  %v1036_v22 = vsel %vm288_vm13, -3e+38, %v982_v16 }
 0x36c   :  { %v264_v25 = vcvt.f32.s32 %v263_v21  ;;  %v296_v27 = vsel %vm109_vm2, %v1036_v22, -inf }
 0x36d   :  { %297 = vmax.xlane.f32.xlu0 %v296_v27  ;;  %v248_v30 = vpop.xlane.xlu0 %247 }
 0x36e   :  { %v267_v13 = vadd.s32 %v266_v24, %v264_v25  ;;  %v249_v34 = vcvt.f32.s32 %v248_v30 }
 0x370   :  { %v1045_v28 = vsel %vm283_vm12, %v267_v13, %v193_v35  ;;  %v252_v16 = vadd.s32 %v251_v32, %v249_v34  ;;  %vm290_vm14 = vcmp.eq.s32.totalorder %v940_v9, %v267_v13 }
 0x371   :  { %v1052_v39 = vsel %vm290_vm14, -3e+38, %v993_v19 }
 0x372   :  { %v1056_v40 = vsel %vm283_vm12, %v252_v16, %v192_v38  ;;  %v302_v23 = vsel %vm109_vm2, %v1052_v39, -inf  ;;  %vm289_vm15 = vcmp.eq.s32.totalorder %v940_v9, %v252_v16 }
 0x373   :  { %v278_v41 = vpop.xlane.xlu2 %277  ;;  %303 = vmax.xlane.f32.xlu2 %v302_v23  ;;  %v1062_v42 = vsel %vm289_vm15, -3e+38, %v1000_v31 }
 0x374   :  { %v279_v33 = vcvt.f32.s32 %v278_v41  ;;  %v299_v26 = vsel %vm109_vm2, %v1062_v42, -inf }
 0x375   :  { %300 = vmax.xlane.f32.xlu1 %v299_v26 }
 0x376   :  { %v282_v19 = vadd.s32 %v281_v43, %v279_v33 }
 0x378   :  { %v1071_v45 = vsel %vm283_vm12, %v282_v19, %v194_v44  ;;  %vm291_vm0 = vcmp.eq.s32.totalorder %v940_v9, %v282_v19 }
 0x379   :  { %v1075_v31 = vsel %vm291_vm0, -3e+38, %v1009_v29 }
 0x37a   :  { %v305_v46 = vsel %vm109_vm2, %v1075_v31, -inf }
 0x37b   :  { %306 = vmax.xlane.f32.xlu0 %v305_v46 }
 0x3e0   :  { %v298_v47 = vpop.xlane.xlu0 %297 }
 0x3e1   :  { %vm308_vm1 = vcmp.ge.f32.partialorder %v1036_v22, %v298_v47 }
 0x3e2   :  { %v312_v48 = vsel %vm308_vm1, %v940_v9, 32 }
 0x3e3   :  { %v316_v36 = vsel %vm109_vm2, %v312_v48, 2147483647 }
 0x3e4   :  { %v318_v49 = vshra.s32 %v316_v36, 16  ;;  %v317_v1 = vand.u32 65535, %v316_v36 }
 0x3e6   :  { %v304_v50 = vpop.xlane.xlu2 %303  ;;  %v320_v51 = vcvt.s32.f32 %v318_v49  ;;  %v319_v3 = vcvt.s32.f32 %v317_v1 }
 0x3e7   :  { %vm310_vm3 = vcmp.ge.f32.partialorder %v1052_v39, %v304_v50 }
 0x3e8   :  { %v314_v52 = vsel %vm310_vm3, %v940_v9, 32  ;;  %v301_v29 = vpop.xlane.xlu1 %300  ;;  %321 = vmin.xlane.f32.xlu1 %v320_v51 }
 0x3e9   :  { %v346_v53 = vsel %vm109_vm2, %v314_v52, 2147483647  ;;  %vm309_vm4 = vcmp.ge.f32.partialorder %v1062_v42, %v301_v29 }
 0x3ea   :  { %v313_v54 = vsel %vm309_vm4, %v940_v9, 32  ;;  %v348_v55 = vshra.s32 %v346_v53, 16  ;;  %v347_v5 = vand.u32 65535, %v346_v53 }
 0x3eb   :  { %v331_v56 = vsel %vm109_vm2, %v313_v54, 2147483647 }
 0x3ec   :  { %v350_v57 = vcvt.s32.f32 %v348_v55  ;;  %v333_v58 = vshra.s32 %v331_v56, 16  ;;  %v332_v6 = vand.u32 65535, %v331_v56  ;;  %v349_v8 = vcvt.s32.f32 %v347_v5 }
 0x3ee   :  { %351 = vmin.xlane.f32.xlu0 %v350_v57  ;;  %v307_v59 = vpop.xlane.xlu0 %306  ;;  %v335_v60 = vcvt.s32.f32 %v333_v58  ;;  %v334_v12 = vcvt.s32.f32 %v332_v6 }
 0x3ef   :  { %vm311_vm5 = vcmp.ge.f32.partialorder %v1075_v31, %v307_v59 }
 0x3f0   :  { %v315_v61 = vsel %vm311_vm5, %v940_v9, 32  ;;  %336 = vmin.xlane.f32.xlu2 %v335_v60 }
 0x3f1   :  { %v361_v62 = vsel %vm109_vm2, %v315_v61, 2147483647 }
 0x3f2   :  { %v363_v63 = vshra.s32 %v361_v62, 16  ;;  %v362_v15 = vand.u32 65535, %v361_v62 }
 0x3f4   :  { %v365_v0 = vcvt.s32.f32 %v363_v63  ;;  %v364_v18 = vcvt.s32.f32 %v362_v15 }
 0x3f6   :  { %366 = vmin.xlane.f32.xlu1 %v365_v0 }
 0x45b   :  { %v322_v2 = vpop.xlane.xlu1 %321 }
 0x45c   :  { %vm323_vm6 = vcmp.eq.f32.partialorder %v320_v51, %v322_v2  ;;  %v328_v24 = vcvt.f32.s32 %v322_v2 }
 0x45d   :  { %v324_v4 = vsel %vm323_vm6, %v319_v3, inf }
 0x45e   :  { %325 = vmin.xlane.f32.xlu2 %v324_v4  ;;  %v329_v27 = vshll.u32 %v328_v24, 16 }
 0x461   :  { %v352_v7 = vpop.xlane.xlu0 %351 }
 0x462   :  { %vm353_vm7 = vcmp.eq.f32.partialorder %v350_v57, %v352_v7  ;;  %v358_v32 = vcvt.f32.s32 %v352_v7 }
 0x463   :  { %v337_v10 = vpop.xlane.xlu2 %336  ;;  %v354_v11 = vsel %vm353_vm7, %v349_v8, inf }
 0x464   :  { %355 = vmin.xlane.f32.xlu1 %v354_v11  ;;  %vm338_vm8 = vcmp.eq.f32.partialorder %v335_v60, %v337_v10  ;;  %v343_v34 = vcvt.f32.s32 %v337_v10  ;;  %v359_v38 = vshll.u32 %v358_v32, 16 }
 0x465   :  { %v339_v14 = vsel %vm338_vm8, %v334_v12, inf  ;;  %vm469_vm8 = vcmp.eq.s32.totalorder %v940_v9, 3 }
 0x466   :  { %340 = vmin.xlane.f32.xlu0 %v339_v14  ;;  %v344_v33 = vshll.u32 %v343_v34, 16 }
 0x469   :  { %v367_v17 = vpop.xlane.xlu1 %366 }
 0x46a   :  { %vm368_vm9 = vcmp.eq.f32.partialorder %v365_v0, %v367_v17  ;;  %v373_v44 = vcvt.f32.s32 %v367_v17 }
 0x46b   :  { %v369_v21 = vsel %vm368_vm9, %v364_v18, inf }
 0x46c   :  { %370 = vmin.xlane.f32.xlu2 %v369_v21  ;;  %v374_v49 = vshll.u32 %v373_v44, 16 }
 0x4d1   :  { %v326_v25 = vpop.xlane.xlu2 %325 }
 0x4d2   :  { %v327_v30 = vcvt.f32.s32 %v326_v25 }
 0x4d4   :  { %v330_v13 = vadd.s32 %v329_v27, %v327_v30 }
 0x4d6   :  { %v1095_v35 = vsel %vm376_vm10, %v330_v13, %v1032_v20  ;;  %vm381_vm11 = vcmp.eq.s32.totalorder %v940_v9, %v330_v13 }
 0x4d7   :  { %v356_v37 = vpop.xlane.xlu1 %355  ;;  %v1099_v16 = vsel %vm381_vm11, -3e+38, %v1036_v22 }
 0x4d8   :  { %v357_v23 = vcvt.f32.s32 %v356_v37  ;;  %v389_v41 = vsel %vm109_vm2, %v1099_v16, -inf }
 0x4d9   :  { %390 = vmax.xlane.f32.xlu0 %v389_v41  ;;  %v341_v43 = vpop.xlane.xlu0 %340 }
 0x4da   :  { %v360_v26 = vadd.s32 %v359_v38, %v357_v23  ;;  %v342_v19 = vcvt.f32.s32 %v341_v43 }
 0x4dc   :  { %v1106_v20 = vsel %vm376_vm10, %v360_v26, %v1045_v28  ;;  %v345_v46 = vadd.s32 %v344_v33, %v342_v19  ;;  %vm383_vm12 = vcmp.eq.s32.totalorder %v940_v9, %v360_v26 }
 0x4dd   :  { %v1110_v22 = vsel %vm383_vm12, -3e+38, %v1052_v39 }
 0x4de   :  { %v1115_v47 = vsel %vm376_vm10, %v345_v46, %v1056_v40  ;;  %v395_v48 = vsel %vm109_vm2, %v1110_v22, -inf  ;;  %vm382_vm13 = vcmp.eq.s32.totalorder %v940_v9, %v345_v46 }
 0x4df   :  { %v371_v36 = vpop.xlane.xlu2 %370  ;;  %396 = vmax.xlane.f32.xlu2 %v395_v48  ;;  %v1121_v28 = vsel %vm382_vm13, -3e+38, %v1062_v42 }
 0x4e0   :  { %v372_v50 = vcvt.f32.s32 %v371_v36  ;;  %v392_v39 = vsel %vm109_vm2, %v1121_v28, -inf }
 0x4e1   :  { %393 = vmax.xlane.f32.xlu1 %v392_v39 }
 0x4e2   :  { %v375_v51 = vadd.s32 %v374_v49, %v372_v50 }
 0x4e4   :  { %v1128_v40 = vsel %vm376_vm10, %v375_v51, %v1071_v45  ;;  %vm384_vm14 = vcmp.eq.s32.totalorder %v940_v9, %v375_v51 }
 0x4e5   :  { %v1132_v52 = vsel %vm384_vm14, -3e+38, %v1075_v31 }
 0x4e6   :  { %v398_v42 = vsel %vm109_vm2, %v1132_v52, -inf }
 0x4e7   :  { %399 = vmax.xlane.f32.xlu0 %v398_v42 }
 0x54c   :  { %v391_v29 = vpop.xlane.xlu0 %390 }
 0x54d   :  { %vm401_vm15 = vcmp.ge.f32.partialorder %v1099_v16, %v391_v29 }
 0x54e   :  { %v405_v53 = vsel %vm401_vm15, %v940_v9, 32 }
 0x54f   :  { %v409_v54 = vsel %vm109_vm2, %v405_v53, 2147483647 }
 0x550   :  { %v411_v55 = vshra.s32 %v409_v54, 16  ;;  %v410_v6 = vand.u32 65535, %v409_v54 }
 0x552   :  { %v397_v56 = vpop.xlane.xlu2 %396  ;;  %v413_v45 = vcvt.s32.f32 %v411_v55  ;;  %v412_v8 = vcvt.s32.f32 %v410_v6 }
 0x553   :  { %vm403_vm0 = vcmp.ge.f32.partialorder %v1110_v22, %v397_v56 }
 0x554   :  { %v407_v57 = vsel %vm403_vm0, %v940_v9, 32  ;;  %v394_v31 = vpop.xlane.xlu1 %393  ;;  %414 = vmin.xlane.f32.xlu1 %v413_v45 }
 0x555   :  { %v439_v58 = vsel %vm109_vm2, %v407_v57, 2147483647  ;;  %vm402_vm1 = vcmp.ge.f32.partialorder %v1121_v28, %v394_v31 }
 0x556   :  { %v406_v59 = vsel %vm402_vm1, %v940_v9, 32  ;;  %v441_v60 = vshra.s32 %v439_v58, 16  ;;  %v440_v11 = vand.u32 65535, %v439_v58 }
 0x557   :  { %v424_v61 = vsel %vm109_vm2, %v406_v59, 2147483647 }
 0x558   :  { %v443_v62 = vcvt.s32.f32 %v441_v60  ;;  %v426_v63 = vshra.s32 %v424_v61, 16  ;;  %v425_v12 = vand.u32 65535, %v424_v61  ;;  %v442_v15 = vcvt.s32.f32 %v440_v11 }
 0x55a   :  { %444 = vmin.xlane.f32.xlu0 %v443_v62  ;;  %v400_v0 = vpop.xlane.xlu0 %399  ;;  %v428_v1 = vcvt.s32.f32 %v426_v63  ;;  %v427_v21 = vcvt.s32.f32 %v425_v12 }
 0x55b   :  { %vm404_vm3 = vcmp.ge.f32.partialorder %v1132_v52, %v400_v0 }
 0x55c   :  { %v408_v2 = vsel %vm404_vm3, %v940_v9, 32  ;;  %429 = vmin.xlane.f32.xlu2 %v428_v1 }
 0x55d   :  { %v454_v3 = vsel %vm109_vm2, %v408_v2, 2147483647 }
 0x55e   :  { %v456_v4 = vshra.s32 %v454_v3, 16  ;;  %v455_v25 = vand.u32 65535, %v454_v3 }
 0x560   :  { %v458_v5 = vcvt.s32.f32 %v456_v4  ;;  %v457_v30 = vcvt.s32.f32 %v455_v25 }
 0x562   :  { %459 = vmin.xlane.f32.xlu1 %v458_v5 }
 0x5c7   :  { %v415_v7 = vpop.xlane.xlu1 %414 }
 0x5c8   :  { %vm416_vm4 = vcmp.eq.f32.partialorder %v413_v45, %v415_v7  ;;  %v421_v13 = vcvt.f32.s32 %v415_v7 }
 0x5c9   :  { %v417_v10 = vsel %vm416_vm4, %v412_v8, inf }
 0x5ca   :  { %418 = vmin.xlane.f32.xlu2 %v417_v10  ;;  %v422_v37 = vshll.u32 %v421_v13, 16 }
 0x5cd   :  { %v445_v14 = vpop.xlane.xlu0 %444 }
 0x5ce   :  { %vm446_vm5 = vcmp.eq.f32.partialorder %v443_v62, %v445_v14  ;;  %v451_v23 = vcvt.f32.s32 %v445_v14 }
 0x5cf   :  { %v430_v17 = vpop.xlane.xlu2 %429  ;;  %v447_v18 = vsel %vm446_vm5, %v442_v15, inf }
 0x5d0   :  { %448 = vmin.xlane.f32.xlu1 %v447_v18  ;;  %vm431_vm6 = vcmp.eq.f32.partialorder %v428_v1, %v430_v17  ;;  %v436_v43 = vcvt.f32.s32 %v430_v17  ;;  %v452_v44 = vshll.u32 %v451_v23, 16 }
 0x5d1   :  { %v432_v24 = vsel %vm431_vm6, %v427_v21, inf  ;;  %vm562_vm6 = vcmp.eq.s32.totalorder %v940_v9, 4 }
 0x5d2   :  { %433 = vmin.xlane.f32.xlu0 %v432_v24  ;;  %v437_v49 = vshll.u32 %v436_v43, 16 }
 0x5d5   :  { %v460_v27 = vpop.xlane.xlu1 %459 }
 0x5d6   :  { %vm461_vm7 = vcmp.eq.f32.partialorder %v458_v5, %v460_v27  ;;  %v466_v51 = vcvt.f32.s32 %v460_v27 }
 0x5d7   :  { %v462_v32 = vsel %vm461_vm7, %v457_v30, inf }
 0x5d8   :  { %463 = vmin.xlane.f32.xlu2 %v462_v32  ;;  %v467_v55 = vshll.u32 %v466_v51, 16 }
 0x63d   :  { %v419_v34 = vpop.xlane.xlu2 %418 }
 0x63e   :  { %v420_v38 = vcvt.f32.s32 %v419_v34 }
 0x640   :  { %v423_v41 = vadd.s32 %v422_v37, %v420_v38 }
 0x642   :  { %v1152_v33 = vsel %vm469_vm8, %v423_v41, %v1095_v35  ;;  %vm474_vm9 = vcmp.eq.s32.totalorder %v940_v9, %v423_v41 }
 0x643   :  { %v449_v26 = vpop.xlane.xlu1 %448  ;;  %v1156_v19 = vsel %vm474_vm9, -3e+38, %v1099_v16 }
 0x644   :  { %v450_v46 = vcvt.f32.s32 %v449_v26  ;;  %v482_v48 = vsel %vm109_vm2, %v1156_v19, -inf }
 0x645   :  { %483 = vmax.xlane.f32.xlu0 %v482_v48  ;;  %v434_v36 = vpop.xlane.xlu0 %433 }
 0x646   :  { %v453_v50 = vadd.s32 %v452_v44, %v450_v46  ;;  %v435_v39 = vcvt.f32.s32 %v434_v36 }
 0x648   :  { %v1163_v35 = vsel %vm469_vm8, %v453_v50, %v1106_v20  ;;  %v438_v42 = vadd.s32 %v437_v49, %v435_v39  ;;  %vm476_vm10 = vcmp.eq.s32.totalorder %v940_v9, %v453_v50 }
 0x649   :  { %v1167_v16 = vsel %vm476_vm10, -3e+38, %v1110_v22 }
 0x64a   :  { %v1172_v29 = vsel %vm469_vm8, %v438_v42, %v1115_v47  ;;  %v488_v53 = vsel %vm109_vm2, %v1167_v16, -inf  ;;  %vm475_vm11 = vcmp.eq.s32.totalorder %v940_v9, %v438_v42 }
 0x64b   :  { %v464_v54 = vpop.xlane.xlu2 %463  ;;  %489 = vmax.xlane.f32.xlu2 %v488_v53  ;;  %v1178_v20 = vsel %vm475_vm11, -3e+38, %v1121_v28 }
 0x64c   :  { %v465_v56 = vcvt.f32.s32 %v464_v54  ;;  %v485_v22 = vsel %vm109_vm2, %v1178_v20, -inf }
 0x64d   :  { %486 = vmax.xlane.f32.xlu1 %v485_v22 }
 0x64e   :  { %v468_v45 = vadd.s32 %v467_v55, %v465_v56 }
 0x650   :  { %v1185_v47 = vsel %vm469_vm8, %v468_v45, %v1128_v40  ;;  %vm477_vm12 = vcmp.eq.s32.totalorder %v940_v9, %v468_v45 }
 0x651   :  { %v1189_v57 = vsel %vm477_vm12, -3e+38, %v1132_v52 }
 0x652   :  { %v491_v28 = vsel %vm109_vm2, %v1189_v57, -inf }
 0x653   :  { %492 = vmax.xlane.f32.xlu0 %v491_v28 }
 0x6b8   :  { %v484_v31 = vpop.xlane.xlu0 %483 }
 0x6b9   :  { %vm494_vm13 = vcmp.ge.f32.partialorder %v1156_v19, %v484_v31 }
 0x6ba   :  { %v498_v58 = vsel %vm494_vm13, %v940_v9, 32 }
 0x6bb   :  { %v502_v59 = vsel %vm109_vm2, %v498_v58, 2147483647 }
 0x6bc   :  { %v504_v60 = vshra.s32 %v502_v59, 16  ;;  %v503_v12 = vand.u32 65535, %v502_v59 }
 0x6be   :  { %v490_v61 = vpop.xlane.xlu2 %489  ;;  %v506_v40 = vcvt.s32.f32 %v504_v60  ;;  %v505_v15 = vcvt.s32.f32 %v503_v12 }
 0x6bf   :  { %vm496_vm14 = vcmp.ge.f32.partialorder %v1167_v16, %v490_v61 }
 0x6c0   :  { %v500_v62 = vsel %vm496_vm14, %v940_v9, 32  ;;  %v487_v52 = vpop.xlane.xlu1 %486  ;;  %507 = vmin.xlane.f32.xlu1 %v506_v40 }
 0x6c1   :  { %v532_v63 = vsel %vm109_vm2, %v500_v62, 2147483647  ;;  %vm495_vm15 = vcmp.ge.f32.partialorder %v1178_v20, %v487_v52 }
 0x6c2   :  { %v499_v0 = vsel %vm495_vm15, %v940_v9, 32  ;;  %v534_v1 = vshra.s32 %v532_v63, 16  ;;  %v533_v18 = vand.u32 65535, %v532_v63 }
 0x6c3   :  { %v517_v2 = vsel %vm109_vm2, %v499_v0, 2147483647 }
 0x6c4   :  { %v536_v3 = vcvt.s32.f32 %v534_v1  ;;  %v519_v4 = vshra.s32 %v517_v2, 16  ;;  %v518_v21 = vand.u32 65535, %v517_v2  ;;  %v535_v25 = vcvt.s32.f32 %v533_v18 }
 0x6c6   :  { %537 = vmin.xlane.f32.xlu0 %v536_v3  ;;  %v493_v5 = vpop.xlane.xlu0 %492  ;;  %v521_v6 = vcvt.s32.f32 %v519_v4  ;;  %v520_v32 = vcvt.s32.f32 %v518_v21 }
 0x6c7   :  { %vm497_vm0 = vcmp.ge.f32.partialorder %v1189_v57, %v493_v5 }
 0x6c8   :  { %v501_v7 = vsel %vm497_vm0, %v940_v9, 32  ;;  %522 = vmin.xlane.f32.xlu2 %v521_v6 }
 0x6c9   :  { %v547_v8 = vsel %vm109_vm2, %v501_v7, 2147483647 }
 0x6ca   :  { %v549_v10 = vshra.s32 %v547_v8, 16  ;;  %v548_v34 = vand.u32 65535, %v547_v8 }
 0x6cc   :  { %v551_v11 = vcvt.s32.f32 %v549_v10  ;;  %v550_v38 = vcvt.s32.f32 %v548_v34 }
 0x6ce   :  { %552 = vmin.xlane.f32.xlu1 %v551_v11 }
 0x733   :  { %v508_v14 = vpop.xlane.xlu1 %507 }
 0x734   :  { %vm509_vm1 = vcmp.eq.f32.partialorder %v506_v40, %v508_v14  ;;  %v514_v41 = vcvt.f32.s32 %v508_v14 }
 0x735   :  { %v510_v17 = vsel %vm509_vm1, %v505_v15, inf }
 0x736   :  { %511 = vmin.xlane.f32.xlu2 %v510_v17  ;;  %v515_v26 = vshll.u32 %v514_v41, 16 }
 0x739   :  { %v538_v24 = vpop.xlane.xlu0 %537 }
 0x73a   :  { %vm539_vm3 = vcmp.eq.f32.partialorder %v536_v3, %v538_v24  ;;  %v544_v46 = vcvt.f32.s32 %v538_v24 }
 0x73b   :  { %v523_v27 = vpop.xlane.xlu2 %522  ;;  %v540_v30 = vsel %vm539_vm3, %v535_v25, inf }
 0x73c   :  { %541 = vmin.xlane.f32.xlu1 %v540_v30  ;;  %vm524_vm4 = vcmp.eq.f32.partialorder %v521_v6, %v523_v27  ;;  %v529_v36 = vcvt.f32.s32 %v523_v27  ;;  %v545_v51 = vshll.u32 %v544_v46, 16 }
 0x73d   :  { %v525_v13 = vsel %vm524_vm4, %v520_v32, inf  ;;  %vm655_vm4 = vcmp.eq.s32.totalorder %v940_v9, 5 }
 0x73e   :  { %526 = vmin.xlane.f32.xlu0 %v525_v13  ;;  %v530_v55 = vshll.u32 %v529_v36, 16 }
 0x741   :  { %v553_v37 = vpop.xlane.xlu1 %552 }
 0x742   :  { %vm554_vm5 = vcmp.eq.f32.partialorder %v551_v11, %v553_v37  ;;  %v559_v45 = vcvt.f32.s32 %v553_v37 }
 0x743   :  { %v555_v23 = vsel %vm554_vm5, %v550_v38, inf }
 0x744   :  { %556 = vmin.xlane.f32.xlu2 %v555_v23  ;;  %v560_v60 = vshll.u32 %v559_v45, 16 }
 0x7a9   :  { %v512_v43 = vpop.xlane.xlu2 %511 }
 0x7aa   :  { %v513_v44 = vcvt.f32.s32 %v512_v43 }
 0x7ac   :  { %v516_v48 = vadd.s32 %v515_v26, %v513_v44 }
 0x7ae   :  { %v1209_v49 = vsel %vm562_vm6, %v516_v48, %v1152_v33  ;;  %vm567_vm7 = vcmp.eq.s32.totalorder %v940_v9, %v516_v48 }
 0x7af   :  { %v542_v50 = vpop.xlane.xlu1 %541  ;;  %v1213_v39 = vsel %vm567_vm7, -3e+38, %v1156_v19 }
 0x7b0   :  { %v543_v42 = vcvt.f32.s32 %v542_v50  ;;  %v575_v53 = vsel %vm109_vm2, %v1213_v39, -inf }
 0x7b1   :  { %576 = vmax.xlane.f32.xlu0 %v575_v53  ;;  %v527_v54 = vpop.xlane.xlu0 %526 }
 0x7b2   :  { %v546_v56 = vadd.s32 %v545_v51, %v543_v42  ;;  %v528_v22 = vcvt.f32.s32 %v527_v54 }
 0x7b4   :  { %v1220_v33 = vsel %vm562_vm6, %v546_v56, %v1163_v35  ;;  %v531_v28 = vadd.s32 %v530_v55, %v528_v22  ;;  %vm569_vm8 = vcmp.eq.s32.totalorder %v940_v9, %v546_v56 }
 0x7b5   :  { %v1224_v19 = vsel %vm569_vm8, -3e+38, %v1167_v16 }
 0x7b6   :  { %v1229_v31 = vsel %vm562_vm6, %v531_v28, %v1172_v29  ;;  %v581_v58 = vsel %vm109_vm2, %v1224_v19, -inf  ;;  %vm568_vm9 = vcmp.eq.s32.totalorder %v940_v9, %v531_v28 }
 0x7b7   :  { %v557_v59 = vpop.xlane.xlu2 %556  ;;  %582 = vmax.xlane.f32.xlu2 %v581_v58  ;;  %v1235_v35 = vsel %vm568_vm9, -3e+38, %v1178_v20 }
 0x7b8   :  { %v558_v61 = vcvt.f32.s32 %v557_v59  ;;  %v578_v16 = vsel %vm109_vm2, %v1235_v35, -inf }
 0x7b9   :  { %579 = vmax.xlane.f32.xlu1 %v578_v16 }
 0x7ba   :  { %v561_v40 = vadd.s32 %v560_v60, %v558_v61 }
 0x7bc   :  { %v1242_v29 = vsel %vm562_vm6, %v561_v40, %v1185_v47  ;;  %vm570_vm10 = vcmp.eq.s32.totalorder %v940_v9, %v561_v40 }
 0x7bd   :  { %v1246_v62 = vsel %vm570_vm10, -3e+38, %v1189_v57 }
 0x7be   :  { %v584_v20 = vsel %vm109_vm2, %v1246_v62, -inf }
 0x7bf   :  { %585 = vmax.xlane.f32.xlu0 %v584_v20 }
 0x824   :  { %v577_v52 = vpop.xlane.xlu0 %576 }
 0x825   :  { %vm587_vm11 = vcmp.ge.f32.partialorder %v1213_v39, %v577_v52 }
 0x826   :  { %v591_v63 = vsel %vm587_vm11, %v940_v9, 32 }
 0x827   :  { %v595_v0 = vsel %vm109_vm2, %v591_v63, 2147483647 }
 0x828   :  { %v597_v1 = vshra.s32 %v595_v0, 16  ;;  %v596_v21 = vand.u32 65535, %v595_v0 }
 0x82a   :  { %v583_v2 = vpop.xlane.xlu2 %582  ;;  %v599_v47 = vcvt.s32.f32 %v597_v1  ;;  %v598_v25 = vcvt.s32.f32 %v596_v21 }
 0x82b   :  { %vm589_vm12 = vcmp.ge.f32.partialorder %v1224_v19, %v583_v2 }
 0x82c   :  { %v593_v3 = vsel %vm589_vm12, %v940_v9, 32  ;;  %v580_v57 = vpop.xlane.xlu1 %579  ;;  %600 = vmin.xlane.f32.xlu1 %v599_v47 }
 0x82d   :  { %v625_v4 = vsel %vm109_vm2, %v593_v3, 2147483647  ;;  %vm588_vm13 = vcmp.ge.f32.partialorder %v1235_v35, %v580_v57 }
 0x82e   :  { %v592_v5 = vsel %vm588_vm13, %v940_v9, 32  ;;  %v627_v6 = vshra.s32 %v625_v4, 16  ;;  %v626_v30 = vand.u32 65535, %v625_v4 }
 0x82f   :  { %v610_v7 = vsel %vm109_vm2, %v592_v5, 2147483647 }
 0x830   :  { %v629_v8 = vcvt.s32.f32 %v627_v6  ;;  %v612_v10 = vshra.s32 %v610_v7, 16  ;;  %v611_v32 = vand.u32 65535, %v610_v7  ;;  %v628_v34 = vcvt.s32.f32 %v626_v30 }
 0x832   :  { %630 = vmin.xlane.f32.xlu0 %v629_v8  ;;  %v586_v11 = vpop.xlane.xlu0 %585  ;;  %v614_v12 = vcvt.s32.f32 %v612_v10  ;;  %v613_v23 = vcvt.s32.f32 %v611_v32 }
 0x833   :  { %vm590_vm14 = vcmp.ge.f32.partialorder %v1246_v62, %v586_v11 }
 0x834   :  { %v594_v14 = vsel %vm590_vm14, %v940_v9, 32  ;;  %615 = vmin.xlane.f32.xlu2 %v614_v12 }
 0x835   :  { %v640_v15 = vsel %vm109_vm2, %v594_v14, 2147483647 }
 0x836   :  { %v642_v17 = vshra.s32 %v640_v15, 16  ;;  %v641_v43 = vand.u32 65535, %v640_v15 }
 0x838   :  { %v644_v18 = vcvt.s32.f32 %v642_v17  ;;  %v643_v44 = vcvt.s32.f32 %v641_v43 }
 0x83a   :  { %645 = vmin.xlane.f32.xlu1 %v644_v18 }
 0x89f   :  { %v601_v24 = vpop.xlane.xlu1 %600 }
 0x8a0   :  { %vm602_vm15 = vcmp.eq.f32.partialorder %v599_v47, %v601_v24  ;;  %v607_v48 = vcvt.f32.s32 %v601_v24 }
 0x8a1   :  { %v603_v27 = vsel %vm602_vm15, %v598_v25, inf }
 0x8a2   :  { %604 = vmin.xlane.f32.xlu2 %v603_v27  ;;  %v608_v50 = vshll.u32 %v607_v48, 16 }
 0x8a5   :  { %v631_v13 = vpop.xlane.xlu0 %630 }
 0x8a6   :  { %vm632_vm0 = vcmp.eq.f32.partialorder %v629_v8, %v631_v13  ;;  %v637_v42 = vcvt.f32.s32 %v631_v13 }
 0x8a7   :  { %v616_v37 = vpop.xlane.xlu2 %615  ;;  %v633_v38 = vsel %vm632_vm0, %v628_v34, inf }
 0x8a8   :  { %634 = vmin.xlane.f32.xlu1 %v633_v38  ;;  %vm617_vm1 = vcmp.eq.f32.partialorder %v614_v12, %v616_v37  ;;  %v622_v54 = vcvt.f32.s32 %v616_v37  ;;  %v638_v45 = vshll.u32 %v637_v42, 16 }
 0x8a9   :  { %v618_v41 = vsel %vm617_vm1, %v613_v23, inf  ;;  %vm748_vm1 = vcmp.eq.s32.totalorder %v940_v9, 6 }
 0x8aa   :  { %619 = vmin.xlane.f32.xlu0 %v618_v41  ;;  %v623_v60 = vshll.u32 %v622_v54, 16 }
 0x8ad   :  { %v646_v26 = vpop.xlane.xlu1 %645 }
 0x8ae   :  { %vm647_vm3 = vcmp.eq.f32.partialorder %v644_v18, %v646_v26  ;;  %v652_v40 = vcvt.f32.s32 %v646_v26 }
 0x8af   :  { %v648_v46 = vsel %vm647_vm3, %v643_v44, inf }
 0x8b0   :  { %649 = vmin.xlane.f32.xlu2 %v648_v46  ;;  %v653_v1 = vshll.u32 %v652_v40, 16 }
 0x915   :  { %v605_v36 = vpop.xlane.xlu2 %604 }
 0x916   :  { %v606_v51 = vcvt.f32.s32 %v605_v36 }
 0x918   :  { %v609_v53 = vadd.s32 %v608_v50, %v606_v51 }
 0x91a   :  { %v1266_v55 = vsel %vm655_vm4, %v609_v53, %v1209_v49  ;;  %vm660_vm5 = vcmp.eq.s32.totalorder %v940_v9, %v609_v53 }
 0x91b   :  { %v635_v56 = vpop.xlane.xlu1 %634  ;;  %v1270_v22 = vsel %vm660_vm5, -3e+38, %v1213_v39 }
 0x91c   :  { %v636_v28 = vcvt.f32.s32 %v635_v56  ;;  %v668_v58 = vsel %vm109_vm2, %v1270_v22, -inf }
 0x91d   :  { %669 = vmax.xlane.f32.xlu0 %v668_v58  ;;  %v620_v59 = vpop.xlane.xlu0 %619 }
 0x91e   :  { %v639_v61 = vadd.s32 %v638_v45, %v636_v28  ;;  %v621_v16 = vcvt.f32.s32 %v620_v59 }
 0x920   :  { %v1277_v49 = vsel %vm655_vm4, %v639_v61, %v1220_v33  ;;  %v624_v20 = vadd.s32 %v623_v60, %v621_v16  ;;  %vm662_vm6 = vcmp.eq.s32.totalorder %v940_v9, %v639_v61 }
 0x921   :  { %v1281_v39 = vsel %vm662_vm6, -3e+38, %v1224_v19 }
 0x922   :  { %v1286_v52 = vsel %vm655_vm4, %v624_v20, %v1229_v31  ;;  %v674_v63 = vsel %vm109_vm2, %v1281_v39, -inf  ;;  %vm661_vm7 = vcmp.eq.s32.totalorder %v940_v9, %v624_v20 }
 0x923   :  { %v650_v0 = vpop.xlane.xlu2 %649  ;;  %675 = vmax.xlane.f32.xlu2 %v674_v63  ;;  %v1292_v33 = vsel %vm661_vm7, -3e+38, %v1235_v35 }
 0x924   :  { %v651_v2 = vcvt.f32.s32 %v650_v0  ;;  %v671_v19 = vsel %vm109_vm2, %v1292_v33, -inf }
 0x925   :  { %672 = vmax.xlane.f32.xlu1 %v671_v19 }
 0x926   :  { %v654_v47 = vadd.s32 %v653_v1, %v651_v2 }
 0x928   :  { %v1299_v31 = vsel %vm655_vm4, %v654_v47, %v1242_v29  ;;  %vm663_vm8 = vcmp.eq.s32.totalorder %v940_v9, %v654_v47 }
 0x929   :  { %v1303_v3 = vsel %vm663_vm8, -3e+38, %v1246_v62 }
 0x92a   :  { %v677_v35 = vsel %vm109_vm2, %v1303_v3, -inf }
 0x92b   :  { %678 = vmax.xlane.f32.xlu0 %v677_v35 }
 0x990   :  { %v670_v57 = vpop.xlane.xlu0 %669 }
 0x991   :  { %vm680_vm9 = vcmp.ge.f32.partialorder %v1270_v22, %v670_v57 }
 0x992   :  { %v684_v4 = vsel %vm680_vm9, %v940_v9, 32 }
 0x993   :  { %v688_v5 = vsel %vm109_vm2, %v684_v4, 2147483647 }
 0x994   :  { %v690_v6 = vshra.s32 %v688_v5, 16  ;;  %v689_v32 = vand.u32 65535, %v688_v5 }
 0x996   :  { %v676_v7 = vpop.xlane.xlu2 %675  ;;  %v692_v29 = vcvt.s32.f32 %v690_v6  ;;  %v691_v34 = vcvt.s32.f32 %v689_v32 }
 0x997   :  { %vm682_vm10 = vcmp.ge.f32.partialorder %v1281_v39, %v676_v7 }
 0x998   :  { %v686_v8 = vsel %vm682_vm10, %v940_v9, 32  ;;  %v673_v62 = vpop.xlane.xlu1 %672  ;;  %693 = vmin.xlane.f32.xlu1 %v692_v29 }
 0x999   :  { %v718_v10 = vsel %vm109_vm2, %v686_v8, 2147483647  ;;  %vm681_vm11 = vcmp.ge.f32.partialorder %v1292_v33, %v673_v62 }
 0x99a   :  { %v685_v11 = vsel %vm681_vm11, %v940_v9, 32  ;;  %v720_v12 = vshra.s32 %v718_v10, 16  ;;  %v719_v38 = vand.u32 65535, %v718_v10 }
 0x99b   :  { %v703_v14 = vsel %vm109_vm2, %v685_v11, 2147483647 }
 0x99c   :  { %v722_v15 = vcvt.s32.f32 %v720_v12  ;;  %v705_v17 = vshra.s32 %v703_v14, 16  ;;  %v704_v23 = vand.u32 65535, %v703_v14  ;;  %v721_v43 = vcvt.s32.f32 %v719_v38 }
 0x99e   :  { %723 = vmin.xlane.f32.xlu0 %v722_v15  ;;  %v679_v18 = vpop.xlane.xlu0 %678  ;;  %v707_v21 = vcvt.s32.f32 %v705_v17  ;;  %v706_v46 = vcvt.s32.f32 %v704_v23 }
 0x99f   :  { %vm683_vm12 = vcmp.ge.f32.partialorder %v1303_v3, %v679_v18 }
 0x9a0   :  { %v687_v24 = vsel %vm683_vm12, %v940_v9, 32  ;;  %708 = vmin.xlane.f32.xlu2 %v707_v21 }
 0x9a1   :  { %v733_v25 = vsel %vm109_vm2, %v687_v24, 2147483647 }
 0x9a2   :  { %v735_v27 = vshra.s32 %v733_v25, 16  ;;  %v734_v36 = vand.u32 65535, %v733_v25 }
 0x9a4   :  { %v737_v30 = vcvt.s32.f32 %v735_v27  ;;  %v736_v51 = vcvt.s32.f32 %v734_v36 }
 0x9a6   :  { %738 = vmin.xlane.f32.xlu1 %v737_v30 }
 0xa0b   :  { %v694_v13 = vpop.xlane.xlu1 %693 }
 0xa0c   :  { %vm695_vm13 = vcmp.eq.f32.partialorder %v692_v29, %v694_v13  ;;  %v700_v53 = vcvt.f32.s32 %v694_v13 }
 0xa0d   :  { %v696_v37 = vsel %vm695_vm13, %v691_v34, inf }
 0xa0e   :  { %697 = vmin.xlane.f32.xlu2 %v696_v37  ;;  %v701_v56 = vshll.u32 %v700_v53, 16 }
 0xa11   :  { %v724_v41 = vpop.xlane.xlu0 %723 }
 0xa12   :  { %vm725_vm14 = vcmp.eq.f32.partialorder %v722_v15, %v724_v41  ;;  %v730_v28 = vcvt.f32.s32 %v724_v41 }
 0xa13   :  { %v709_v26 = vpop.xlane.xlu2 %708  ;;  %v726_v44 = vsel %vm725_vm14, %v721_v43, inf  ;;  %vm841_vm14 = vcmp.eq.s32.totalorder %v940_v9, 7 }
 0xa14   :  { %727 = vmin.xlane.f32.xlu1 %v726_v44  ;;  %vm710_vm15 = vcmp.eq.f32.partialorder %v707_v21, %v709_v26  ;;  %v715_v59 = vcvt.f32.s32 %v709_v26  ;;  %v731_v40 = vshll.u32 %v730_v28, 16 }
 0xa15   :  { %v711_v48 = vsel %vm710_vm15, %v706_v46, inf  ;;  %vm846_vm15 = vcmask 64512  }
 0xa16   :  { %712 = vmin.xlane.f32.xlu0 %v711_v48  ;;  %v716_v1 = vshll.u32 %v715_v59, 16 }
 0xa19   :  { %v739_v50 = vpop.xlane.xlu1 %738 }
 0xa1a   :  { %vm740_vm0 = vcmp.eq.f32.partialorder %v737_v30, %v739_v50  ;;  %v745_v47 = vcvt.f32.s32 %v739_v50 }
 0xa1b   :  { %v741_v42 = vsel %vm740_vm0, %v736_v51, inf }
 0xa1c   :  { %742 = vmin.xlane.f32.xlu2 %v741_v42 }
 0xa81   :  { %v698_v54 = vpop.xlane.xlu2 %697 }
 0xa82   :  { %v699_v45 = vcvt.f32.s32 %v698_v54 }
 0xa84   :  { %v702_v58 = vadd.s32 %v701_v56, %v699_v45 }
 0xa86   :  { %v1323_v60 = vsel %vm748_vm1, %v702_v58, %v1266_v55  ;;  %vm753_vm3 = vcmp.eq.s32.totalorder %v940_v9, %v702_v58 }
 0xa87   :  { %v728_v61 = vpop.xlane.xlu1 %727  ;;  %v757_v16 = vsel %vm753_vm3, -3e+38, %v1270_v22 }
 0xa88   :  { %v729_v20 = vcvt.f32.s32 %v728_v61  ;;  %v761_v63 = vsel %vm109_vm2, %v757_v16, -inf }
 0xa89   :  { %762 = vmax.xlane.f32.xlu0 %v761_v63  ;;  %v713_v0 = vpop.xlane.xlu0 %712 }
 0xa8a   :  { %v732_v2 = vadd.s32 %v731_v40, %v729_v20  ;;  %v714_v19 = vcvt.f32.s32 %v713_v0 }
 0xa8c   :  { %v1331_v55 = vsel %vm748_vm1, %v732_v2, %v1277_v49  ;;  %v717_v35 = vadd.s32 %v716_v1, %v714_v19  ;;  %vm755_vm4 = vcmp.eq.s32.totalorder %v940_v9, %v732_v2  ;;  %v746_v49 = vshll.u32 %v745_v47, 16 }
 0xa8d   :  { %v759_v22 = vsel %vm755_vm4, -3e+38, %v1281_v39 }
 0xa8e   :  { %v1338_v57 = vsel %vm748_vm1, %v717_v35, %v1286_v52  ;;  %v767_v4 = vsel %vm109_vm2, %v759_v22, -inf  ;;  %vm754_vm5 = vcmp.eq.s32.totalorder %v940_v9, %v717_v35 }
 0xa8f   :  { %v743_v5 = vpop.xlane.xlu2 %742  ;;  %768 = vmax.xlane.f32.xlu2 %v767_v4  ;;  %v758_v6 = vsel %vm754_vm5, -3e+38, %v1292_v33 }
 0xa90   :  { %v744_v7 = vcvt.f32.s32 %v743_v5  ;;  %v764_v29 = vsel %vm109_vm2, %v758_v6, -inf }
 0xa91   :  { %765 = vmax.xlane.f32.xlu1 %v764_v29 }
 0xa92   :  { %v747_v8 = vadd.s32 %v746_v49, %v744_v7 }
 0xa94   :  { %v1347_v39 = vsel %vm748_vm1, %v747_v8, %v1299_v31  ;;  %vm756_vm6 = vcmp.eq.s32.totalorder %v940_v9, %v747_v8 }
 0xa95   :  { %v760_v52 = vsel %vm756_vm6, -3e+38, %v1303_v3 }
 0xa96   :  { %v770_v62 = vsel %vm109_vm2, %v760_v52, -inf }
 0xa97   :  { %771 = vmax.xlane.f32.xlu0 %v770_v62 }
 0xafc   :  { %v763_v10 = vpop.xlane.xlu0 %762 }
 0xafd   :  { %vm773_vm7 = vcmp.ge.f32.partialorder %v757_v16, %v763_v10 }
 0xafe   :  { %v777_v33 = vsel %vm773_vm7, %v940_v9, 32 }
 0xaff   :  { %v781_v11 = vsel %vm109_vm2, %v777_v33, 2147483647 }
 0xb00   :  { %v783_v12 = vshra.s32 %v781_v11, 16  ;;  %v782_v23 = vand.u32 65535, %v781_v11 }
 0xb02   :  { %v769_v14 = vpop.xlane.xlu2 %768  ;;  %v785_v15 = vcvt.s32.f32 %v783_v12  ;;  %v784_v43 = vcvt.s32.f32 %v782_v23 }
 0xb03   :  { %vm775_vm8 = vcmp.ge.f32.partialorder %v759_v22, %v769_v14 }
 0xb04   :  { %v779_v31 = vsel %vm775_vm8, %v940_v9, 32  ;;  %v766_v17 = vpop.xlane.xlu1 %765  ;;  %786 = vmin.xlane.f32.xlu1 %v785_v15 }
 0xb05   :  { %v811_v18 = vsel %vm109_vm2, %v779_v31, 2147483647  ;;  %vm774_vm9 = vcmp.ge.f32.partialorder %v758_v6, %v766_v17 }
 0xb06   :  { %v778_v3 = vsel %vm774_vm9, %v940_v9, 32  ;;  %v813_v21 = vshra.s32 %v811_v18, 16  ;;  %v812_v44 = vand.u32 65535, %v811_v18 }
 0xb07   :  { %v796_v24 = vsel %vm109_vm2, %v778_v3, 2147483647 }
 0xb08   :  { %v815_v25 = vcvt.s32.f32 %v813_v21  ;;  %v798_v27 = vshra.s32 %v796_v24, 16  ;;  %v797_v46 = vand.u32 65535, %v796_v24  ;;  %v814_v36 = vcvt.s32.f32 %v812_v44 }
 0xb0a   :  { %816 = vmin.xlane.f32.xlu0 %v815_v25  ;;  %v772_v30 = vpop.xlane.xlu0 %771  ;;  %v800_v32 = vcvt.s32.f32 %v798_v27  ;;  %v799_v42 = vcvt.s32.f32 %v797_v46 }
 0xb0b   :  { %vm776_vm10 = vcmp.ge.f32.partialorder %v760_v52, %v772_v30 }
 0xb0c   :  { %v780_v13 = vsel %vm776_vm10, %v940_v9, 32  ;;  %801 = vmin.xlane.f32.xlu2 %v800_v32 }
 0xb0d   :  { %v826_v34 = vsel %vm109_vm2, %v780_v13, 2147483647 }
 0xb0e   :  { %v828_v37 = vshra.s32 %v826_v34, 16  ;;  %v827_v54 = vand.u32 65535, %v826_v34 }
 0xb10   :  { %v830_v38 = vcvt.s32.f32 %v828_v37  ;;  %v829_v45 = vcvt.s32.f32 %v827_v54 }
 0xb12   :  { %831 = vmin.xlane.f32.xlu1 %v830_v38 }
 0xb77   :  { %v787_v41 = vpop.xlane.xlu1 %786 }
 0xb78   :  { %vm788_vm11 = vcmp.eq.f32.partialorder %v785_v15, %v787_v41  ;;  %v793_v58 = vcvt.f32.s32 %v787_v41 }
 0xb79   :  { %v789_v26 = vsel %vm788_vm11, %v784_v43, inf }
 0xb7a   :  { %790 = vmin.xlane.f32.xlu2 %v789_v26  ;;  %v794_v61 = vshll.u32 %v793_v58, 16 }
 0xb7d   :  { %v817_v48 = vpop.xlane.xlu0 %816 }
 0xb7e   :  { %vm818_vm12 = vcmp.eq.f32.partialorder %v815_v25, %v817_v48  ;;  %v823_v40 = vcvt.f32.s32 %v817_v48 }
 0xb7f   :  { %v802_v50 = vpop.xlane.xlu2 %801  ;;  %v819_v51 = vsel %vm818_vm12, %v814_v36, inf }
 0xb80   :  { %820 = vmin.xlane.f32.xlu1 %v819_v51  ;;  %vm803_vm13 = vcmp.eq.f32.partialorder %v800_v32, %v802_v50  ;;  %v808_v63 = vcvt.f32.s32 %v802_v50  ;;  %v824_v2 = vshll.u32 %v823_v40, 16 }
 0xb81   :  { %v804_v53 = vsel %vm803_vm13, %v799_v42, inf }
 0xb82   :  { %805 = vmin.xlane.f32.xlu0 %v804_v53  ;;  %v809_v35 = vshll.u32 %v808_v63, 16 }
 0xb85   :  { %v832_v56 = vpop.xlane.xlu1 %831 }
 0xb86   :  { %vm833_vm2 = vcmp.eq.f32.partialorder %v830_v38, %v832_v56  ;;  %v838_v5 = vcvt.f32.s32 %v832_v56 }
 0xb87   :  { %v834_v28 = vsel %vm833_vm2, %v829_v45, inf }
 0xb88   :  { %835 = vmin.xlane.f32.xlu2 %v834_v28  ;;  %v839_v29 = vshll.u32 %v838_v5, 16 }
 0xbed   :  { %v791_v59 = vpop.xlane.xlu2 %790 }
 0xbee   :  { %v792_v16 = vcvt.f32.s32 %v791_v59 }
 0xbf0   :  { %v795_v20 = vadd.s32 %v794_v61, %v792_v16 }
 0xbf2   :  { %v842_v0 = vsel %vm841_vm14, %v795_v20, %v1323_v60 }
 0xbf3   :  { %847 = vst.msk [vmem:[%s1392_s3] sm:$0xff] %vm846_vm15, %v842_v0  ;;  %v821_v1 = vpop.xlane.xlu1 %820 }
 0xbf4   :  { %v822_v19 = vcvt.f32.s32 %v821_v1 }
 0xbf5   :  { %v806_v47 = vpop.xlane.xlu0 %805 }
 0xbf6   :  { %v825_v22 = vadd.s32 %v824_v2, %v822_v19  ;;  %v807_v4 = vcvt.f32.s32 %v806_v47 }
 0xbf8   :  { %v844_v6 = vsel %vm841_vm14, %v825_v22, %v1331_v55  ;;  %v810_v49 = vadd.s32 %v809_v35, %v807_v4 }
 0xbf9   :  { %849 = vst.msk [vmem:[%s1392_s3 + $0x10] sm:$0xff] %vm846_vm15, %v844_v6 }
 0xbfa   :  { %v843_v60 = vsel %vm841_vm14, %v810_v49, %v1338_v57 }
 0xbfb   :  { %848 = vst.msk [vmem:[%s1392_s3 + $0x8] sm:$0xff] %vm846_vm15, %v843_v60  ;;  %v836_v7 = vpop.xlane.xlu2 %835 }
 0xbfc   :  { %v837_v8 = vcvt.f32.s32 %v836_v7 }
 0xbfe   :  { %v840_v52 = vadd.s32 %v839_v29, %v837_v8 }
 0xc00   :  { %v845_v55 = vsel %vm841_vm14, %v840_v52, %v1347_v39 }
 0xc01   :  { %850 = vst.msk [vmem:[%s1392_s3 + $0x18] sm:$0xff] %vm846_vm15, %v845_v55 }

</bundles_post_ra>
